<compile_context>
chip_gen: v7x
topology: tpu7x:2x2x1
jax: 0.10.0
libtpu: 0.0.40
codegen_flags: <defaults>
</compile_context>

<pallas_src>
import functools
import math

import jax
import jax.numpy as jnp
from jax import lax
from jax.experimental import pallas as pl
from jax.experimental.pallas import tpu as pltpu


# ------------------------------ Pallas kernel ------------------------------- #

def _r_resblock_kernel(x_ref, a1_ref, ask_ref, a2_ref, s1_ref,
                       sc1_ref, sh1_ref, sc2_ref, sh2_ref, bias_ref,
                       o_ref, *, ksize, pad, hout):
    """Whole R_ResBlock for a tile of BT batch elements; activations stay in VMEM.

    x_ref    : (BT*H, W*Cin)              f32   lane-dense input (w-major, c-minor)
    a1/ask   : (W*Cin, K*Wout*Cmid)       bf16  lane-stacked per-kh column operators
    a2       : (Wout*Cmid, K*Wout*Cmid)   bf16  same, for the stride-1 deconv2
    s1       : (K, BT*Hout, BT*H)         f32   0/1 block-diag stride-2 row scatters
    sc/sh    : (1, cols)                  f32   folded eval-mode BN scale / shift
    bias     : (1, Wout*Cmid)             f32   skip-deconv bias tiled over Wout
    o_ref    : (BT*Hout, Wout*Cmid)       f32
    """
    L = o_ref.shape[-1]                 # Wout*Cmid  (lane width, 128 here)
    rows_out = o_ref.shape[0]           # BT*Hout

    x = x_ref[...]                                                   # (BT*H, W*Cin) f32
    # fused eval-mode BN1 + ReLU on the VPU, then bf16 for the MXU
    t_b = jnp.maximum(x * sc1_ref[...] + sh1_ref[...], 0.0).astype(jnp.bfloat16)
    x_b = x.astype(jnp.bfloat16)

    # ---- first layer: ONE wide bf16 matmul per path over all kh taps (re-associated) ----
    p1 = jnp.dot(t_b, a1_ref[...], preferred_element_type=jnp.float32)   # (BT*H, K*L)
    psk = jnp.dot(x_b, ask_ref[...], preferred_element_type=jnp.float32)  # (BT*H, K*L)

    # ---- shared stride-2 row scatter (block-diagonal over the batch tile), exact f32 ----
    o1 = None   # deconv1 output
    sk = None   # skip-deconv output
    for kh in range(ksize):
        comb = jnp.concatenate(
            [p1[:, kh * L:(kh + 1) * L], psk[:, kh * L:(kh + 1) * L]], axis=-1)
        scat = jnp.dot(s1_ref[kh], comb, preferred_element_type=jnp.float32)
        if o1 is None:
            o1, sk = scat[:, :L], scat[:, L:]
        else:
            o1, sk = o1 + scat[:, :L], sk + scat[:, L:]

    # ---- BN2 + ReLU, then deconv2 (stride 1): one wide matmul + XLU sublane shifts ----
    v_b = jnp.maximum(o1 * sc2_ref[...] + sh2_ref[...], 0.0).astype(jnp.bfloat16)
    p2 = jnp.dot(v_b, a2_ref[...], preferred_element_type=jnp.float32)   # (BT*Hout, K*L)

    row = lax.broadcasted_iota(jnp.int32, (rows_out, 1), 0) % hout   # row within element
    out2 = p2[:, pad * L:(pad + 1) * L]                              # kh == pad: shift 0
    for kh in range(ksize):
        d = kh - pad
        if d == 0:
            continue
        piece = p2[:, kh * L:(kh + 1) * L]
        rolled = pltpu.roll(piece, shift=d % rows_out, axis=0)       # out[r] = piece[r-d]
        mask = (row >= d) if d > 0 else (row < hout + d)             # per-element edges
        out2 = out2 + jnp.where(mask, rolled, 0.0)

    o_ref[...] = out2 + sk + bias_ref[...]                           # residual + bias


# --------------------- structured-operator construction --------------------- #
# ConvTranspose2d:  out[oh,ow,co] = sum_{ih,iw,ci,kh,kw} x[ih,iw,ci]*W[ci,co,kh,kw]
#                   with oh = ih*s - p + kh,  ow = iw*s - p + kw.
# Row side    -> S_kh[oh, ih]                 = 1 iff ih*s - p + kh == oh
# Column side -> A_kh[iw*Cin+ci, ow*Cout+co]  = W[ci,co,kh, ow+p-iw*s]  (if in [0,K))

def _build_row_scatter(hin, hout, stride, pad, ksize, dtype):
    oh = jnp.arange(hout)
    ih = jnp.arange(hin)
    kh = jnp.arange(ksize)
    s = (ih[None, None, :] * stride - pad + kh[:, None, None]) == oh[None, :, None]
    return s.astype(dtype)                                   # (K, hout, hin)


def _build_col_maps(wt, win, wout, stride, pad, dtype):
    cin, cout, ksz, kwsz = wt.shape
    iw = jnp.arange(win)
    ow = jnp.arange(wout)
    kw = ow[None, :] + pad - stride * iw[:, None]            # (win, wout)
    valid = (kw >= 0) & (kw < kwsz)
    kw_idx = jnp.clip(kw, 0, kwsz - 1)
    w_t = jnp.transpose(wt, (2, 3, 0, 1))                    # (KH, KW, Cin, Cout)
    a = w_t[:, kw_idx, :, :]                                 # (KH, win, wout, Cin, Cout)
    a = jnp.where(valid[None, :, :, None, None], a, 0.0)
    a = jnp.transpose(a, (0, 1, 3, 2, 4))                    # (KH, win, Cin, wout, Cout)
    return a.reshape(ksz, win * cin, wout * cout).astype(dtype)


def _lane_stack(a_k):
    # (K, rows, cols) -> (rows, K*cols): kh-major lane blocks for one wide matmul.
    k, r, c = a_k.shape
    return jnp.transpose(a_k, (1, 0, 2)).reshape(r, k * c)


def _block_diag(mats, bt):
    # (K, r, c) -> (K, bt*r, bt*c), bt copies on the diagonal (per-batch independence).
    k, r, c = mats.shape
    eye = jnp.eye(bt, dtype=mats.dtype)
    return jnp.einsum('bd,krc->kbrdc', eye, mats).reshape(k, bt * r, bt * c)


# ------------------------------ forward wrappers ----------------------------- #

def r_resblock_forward_2d(params, x2d, n, h, w, cin, kernel_size=5, eps=1e-5,
                          batch_tile=2):
    """Lane-dense entry point: x2d is (N*H, W*Cin); returns (N*Hout, Wout*Cmid)."""
    assert kernel_size % 2 == 1, "structured maps assume odd kernel_size (pad = (k-1)/2)"
    cmid = cin // 2
    pad = (kernel_size - 1) // 2
    out_pad = kernel_size % 2
    hout = (h - 1) * 2 - 2 * pad + kernel_size + out_pad
    wout = (w - 1) * 2 - 2 * pad + kernel_size + out_pad
    bt = math.gcd(batch_tile, n)                      # batch elements per grid step
    k = kernel_size

    # folded eval-mode BN, tiled to the (w-major, c-minor) column layout
    s1 = params["bn1"]["gamma"] / jnp.sqrt(params["bn1"]["var"] + eps)
    b1 = params["bn1"]["beta"] - params["bn1"]["mean"] * s1
    s2 = params["bn2"]["gamma"] / jnp.sqrt(params["bn2"]["var"] + eps)
    b2 = params["bn2"]["beta"] - params["bn2"]["mean"] * s2
    sc1 = jnp.tile(s1, w).reshape(1, w * cin)
    sh1 = jnp.tile(b1, w).reshape(1, w * cin)
    sc2 = jnp.tile(s2, wout).reshape(1, wout * cmid)
    sh2 = jnp.tile(b2, wout).reshape(1, wout * cmid)
    bias_row = jnp.tile(params["bskip"], wout).reshape(1, wout * cmid)

    wd = jnp.bfloat16                                 # MXU-native; halves weight DMA
    A1cat = _lane_stack(_build_col_maps(params["w1"], w, wout, 2, pad, wd))
    ASKcat = _lane_stack(_build_col_maps(params["wskip"], w, wout, 2, pad, wd))
    A2cat = _lane_stack(_build_col_maps(params["w2"], wout, wout, 1, pad, wd))
    # 0/1 stride-2 row scatter, block-diagonal over the batch tile, f32 for exactness.
    S1blk = _block_diag(_build_row_scatter(h, hout, 2, pad, k, jnp.float32), bt)

    grid = (n // bt,)
    grid_spec = pltpu.PrefetchScalarGridSpec(
        num_scalar_prefetch=0,
        grid=grid,
        in_specs=[
            pl.BlockSpec((bt * h, w * cin), lambda i: (i, 0)),                  # x2d
            pl.BlockSpec((w * cin, k * wout * cmid), lambda i: (0, 0)),         # A1cat
            pl.BlockSpec((w * cin, k * wout * cmid), lambda i: (0, 0)),         # ASKcat
            pl.BlockSpec((wout * cmid, k * wout * cmid), lambda i: (0, 0)),     # A2cat
            pl.BlockSpec((k, bt * hout, bt * h), lambda i: (0, 0, 0)),          # S1blk
            pl.BlockSpec((1, w * cin), lambda i: (0, 0)),                       # sc1
            pl.BlockSpec((1, w * cin), lambda i: (0, 0)),                       # sh1
            pl.BlockSpec((1, wout * cmid), lambda i: (0, 0)),                   # sc2
            pl.BlockSpec((1, wout * cmid), lambda i: (0, 0)),                   # sh2
            pl.BlockSpec((1, wout * cmid), lambda i: (0, 0)),                   # bias
        ],
        out_specs=pl.BlockSpec((bt * hout, wout * cmid), lambda i: (i, 0)),
    )

    out2d = pl.pallas_call(
        functools.partial(_r_resblock_kernel, ksize=k, pad=pad, hout=hout),
        out_shape=jax.ShapeDtypeStruct((n * hout, wout * cmid), jnp.float32),
        grid_spec=grid_spec,
        compiler_params=pltpu.CompilerParams(
            dimension_semantics=("parallel",),          # batch tiles across TCs
            vmem_limit_bytes=32 * 1024 * 1024),
    )(x2d, A1cat, ASKcat, A2cat, S1blk, sc1, sh1, sc2, sh2, bias_row)
    return out2d, hout, wout, cmid


def r_resblock_forward(params, x_nchw, kernel_size=5, eps=1e-5, batch_tile=2):
    """NCHW wrapper (chained blocks should stay in the 2D lane-dense layout instead)."""
    n, cin, h, w = x_nchw.shape
    x2d = jnp.transpose(x_nchw, (0, 2, 3, 1)).astype(jnp.float32).reshape(n * h, w * cin)
    out2d, hout, wout, cmid = r_resblock_forward_2d(
        params, x2d, n, h, w, cin, kernel_size=kernel_size, eps=eps,
        batch_tile=batch_tile)
    out = out2d.reshape(n, hout, wout, cmid)
    return jnp.transpose(out, (0, 3, 1, 2))              # back to NCHW


# --------------------------- pure-JAX reference ------------------------------ #

def _convT_ref(x_nhwc, wt, stride, pad, out_pad):
    K = wt.shape[2]
    w_conv = jnp.transpose(wt[:, :, ::-1, ::-1], (2, 3, 0, 1))       # HWIO, flipped
    lo, hi = K - 1 - pad, K - 1 - pad + out_pad
    return lax.conv_general_dilated(
        x_nhwc, w_conv, window_strides=(1, 1),
        padding=[(lo, hi), (lo, hi)],
        lhs_dilation=(stride, stride), rhs_dilation=(1, 1),
        dimension_numbers=("NHWC", "HWIO", "NHWC"))


def r_resblock_ref(params, x_nchw, eps=1e-5):
    x = jnp.transpose(x_nchw, (0, 2, 3, 1)).astype(jnp.float32)

    def bn(v, p):
        sc = p["gamma"] / jnp.sqrt(p["var"] + eps)
        return v * sc + (p["beta"] - p["mean"] * sc)

    rw = lambda w: w.astype(jnp.bfloat16).astype(jnp.float32)   # match kernel's bf16 weights
    t = jnp.maximum(bn(x, params["bn1"]), 0.0)
    o1 = _convT_ref(t, rw(params["w1"]), 2, 2, 1)
    v = jnp.maximum(bn(o1, params["bn2"]), 0.0)
    o2 = _convT_ref(v, rw(params["w2"]), 1, 2, 0)
    sk = _convT_ref(x, rw(params["wskip"]), 2, 2, 1) + params["bskip"]
    return jnp.transpose(o2 + sk, (0, 3, 1, 2))


# ------------------------------- parameters ---------------------------------- #

def init_params(key, in_channels, kernel_size=5):
    cmid = in_channels // 2
    ks = jax.random.split(key, 6)

    def bn_p(k, c):
        k1, k2, k3, k4 = jax.random.split(k, 4)
        return dict(gamma=1.0 + 0.1 * jax.random.normal(k1, (c,), jnp.float32),
                    beta=0.1 * jax.random.normal(k2, (c,), jnp.float32),
                    mean=0.1 * jax.random.normal(k3, (c,), jnp.float32),
                    var=1.0 + 0.1 * jax.random.uniform(k4, (c,), jnp.float32))

    def w_convT(k, cin, cout):
        bound = 1.0 / math.sqrt(cout * kernel_size * kernel_size)
        return jax.random.uniform(k, (cin, cout, kernel_size, kernel_size),
                                  jnp.float32, -bound, bound)

    return dict(
        bn1=bn_p(ks[0], in_channels),
        bn2=bn_p(ks[1], cmid),
        w1=w_convT(ks[2], in_channels, cmid),       # deconv1 (bias=False)
        w2=w_convT(ks[3], cmid, cmid),              # deconv2 (bias=False)
        wskip=w_convT(ks[4], in_channels, cmid),    # deconv_skip (bias=True)
        bskip=jax.random.uniform(ks[5], (cmid,), jnp.float32, -0.1, 0.1),
    )


# ----------------------------------- main ------------------------------------ #

if __name__ == "__main__":
    key = jax.random.PRNGKey(0)
    k_params, k_x = jax.random.split(key)

    # W*Cin = 128, Wout*Cmid = 128 (lane dense); N=8 with BT=2 -> grid of 4 steps
    # (>=2 per TensorCore on v7x, so DMA is hidden by BlockSpec pipelining).
    N, Cin, H, W = 8, 8, 16, 16
    params = init_params(k_params, Cin)
    x = jax.random.normal(k_x, (N, Cin, H, W), jnp.float32)

    out = jax.jit(r_resblock_forward)(params, x)
    jax.block_until_ready(out)

    assert out.shape == (N, Cin // 2, 2 * H, 2 * W), out.shape

    ref = r_resblock_ref(params, x)
    err = float(jnp.max(jnp.abs(out - ref)))
    assert jnp.allclose(out, ref, rtol=5e-2, atol=5e-2), err

    print("KERNEL_OK")
</pallas_src>

<mosaic_0001>
module attributes {stable_mosaic.version = 11 : i64} {
  func.func @_r_resblock_kernel(%arg0: i32, %arg1: memref<32x128xf32, #tpu.memory_space<vmem>>, %arg2: memref<128x640xbf16, #tpu.memory_space<vmem>>, %arg3: memref<128x640xbf16, #tpu.memory_space<vmem>>, %arg4: memref<128x640xbf16, #tpu.memory_space<vmem>>, %arg5: memref<5x64x32xf32, #tpu.memory_space<vmem>>, %arg6: memref<1x128xf32, #tpu.memory_space<vmem>>, %arg7: memref<1x128xf32, #tpu.memory_space<vmem>>, %arg8: memref<1x128xf32, #tpu.memory_space<vmem>>, %arg9: memref<1x128xf32, #tpu.memory_space<vmem>>, %arg10: memref<1x128xf32, #tpu.memory_space<vmem>>, %arg11: memref<64x128xf32, #tpu.memory_space<vmem>>) attributes {dimension_semantics = [#tpu.dimension_semantics<parallel>], iteration_bounds = array<i64: 4>, scalar_prefetch = 0 : i64, scratch_operands = 0 : i64, tpu.core_type = #tpu.core_type<tc>, window_params = [{transform_indices = @transform_0, window_bounds = array<i64: 32, 128>}, {pipeline_mode = #tpu.pipeline_mode<synchronous>, transform_indices = @transform_1, window_bounds = array<i64: 128, 640>}, {pipeline_mode = #tpu.pipeline_mode<synchronous>, transform_indices = @transform_2, window_bounds = array<i64: 128, 640>}, {pipeline_mode = #tpu.pipeline_mode<synchronous>, transform_indices = @transform_3, window_bounds = array<i64: 128, 640>}, {pipeline_mode = #tpu.pipeline_mode<synchronous>, transform_indices = @transform_4, window_bounds = array<i64: 5, 64, 32>}, {pipeline_mode = #tpu.pipeline_mode<synchronous>, transform_indices = @transform_5, window_bounds = array<i64: 1, 128>}, {pipeline_mode = #tpu.pipeline_mode<synchronous>, transform_indices = @transform_6, window_bounds = array<i64: 1, 128>}, {pipeline_mode = #tpu.pipeline_mode<synchronous>, transform_indices = @transform_7, window_bounds = array<i64: 1, 128>}, {pipeline_mode = #tpu.pipeline_mode<synchronous>, transform_indices = @transform_8, window_bounds = array<i64: 1, 128>}, {pipeline_mode = #tpu.pipeline_mode<synchronous>, transform_indices = @transform_9, window_bounds = array<i64: 1, 128>}, {transform_indices = @transform_10, window_bounds = array<i64: 64, 128>}]} {
    %c0 = arith.constant 0 : index
    %c0_0 = arith.constant 0 : index
    %0 = vector.load %arg1[%c0, %c0_0] : memref<32x128xf32, #tpu.memory_space<vmem>>, vector<32x128xf32>
    %c0_1 = arith.constant 0 : index
    %c0_2 = arith.constant 0 : index
    %1 = vector.load %arg6[%c0_1, %c0_2] : memref<1x128xf32, #tpu.memory_space<vmem>>, vector<1x128xf32>
    %2 = vector.broadcast %1 : vector<1x128xf32> to vector<32x128xf32>
    %3 = arith.mulf %0, %2 : vector<32x128xf32>
    %c0_3 = arith.constant 0 : index
    %c0_4 = arith.constant 0 : index
    %4 = vector.load %arg7[%c0_3, %c0_4] : memref<1x128xf32, #tpu.memory_space<vmem>>, vector<1x128xf32>
    %5 = vector.broadcast %4 : vector<1x128xf32> to vector<32x128xf32>
    %6 = arith.addf %3, %5 : vector<32x128xf32>
    %cst = arith.constant 0.000000e+00 : f32
    %7 = vector.broadcast %cst : f32 to vector<32x128xf32>
    %8 = arith.maximumf %6, %7 : vector<32x128xf32>
    %9 = arith.truncf %8 : vector<32x128xf32> to vector<32x128xbf16>
    %10 = arith.truncf %0 : vector<32x128xf32> to vector<32x128xbf16>
    %c0_5 = arith.constant 0 : index
    %c0_6 = arith.constant 0 : index
    %11 = vector.load %arg2[%c0_5, %c0_6] : memref<128x640xbf16, #tpu.memory_space<vmem>>, vector<128x640xbf16>
    %cst_7 = arith.constant dense<0.000000e+00> : vector<32x640xf32>
    %12 = tpu.matmul %9, %11, %cst_7 {dimension_numbers = #tpu.dot_dimension_numbers<[1], [0], [0], [1], [0, 0, 1, 1], [], []>} : vector<32x128xbf16>, vector<128x640xbf16>, vector<32x640xf32> -> vector<32x640xf32>
    %c0_8 = arith.constant 0 : index
    %c0_9 = arith.constant 0 : index
    %13 = vector.load %arg3[%c0_8, %c0_9] : memref<128x640xbf16, #tpu.memory_space<vmem>>, vector<128x640xbf16>
    %cst_10 = arith.constant dense<0.000000e+00> : vector<32x640xf32>
    %14 = tpu.matmul %10, %13, %cst_10 {dimension_numbers = #tpu.dot_dimension_numbers<[1], [0], [0], [1], [0, 0, 1, 1], [], []>} : vector<32x128xbf16>, vector<128x640xbf16>, vector<32x640xf32> -> vector<32x640xf32>
    %15 = vector.extract_strided_slice %12 {offsets = [0, 0], sizes = [32, 128], strides = [1, 1]} : vector<32x640xf32> to vector<32x128xf32>
    %16 = vector.extract_strided_slice %14 {offsets = [0, 0], sizes = [32, 128], strides = [1, 1]} : vector<32x640xf32> to vector<32x128xf32>
    %17 = tpu.concatenate %15, %16 in 1 : vector<32x128xf32>, vector<32x128xf32> -> vector<32x256xf32>
    %c0_11 = arith.constant 0 : index
    %c0_12 = arith.constant 0 : index
    %c0_13 = arith.constant 0 : index
    %18 = vector.load %arg5[%c0_11, %c0_12, %c0_13] : memref<5x64x32xf32, #tpu.memory_space<vmem>>, vector<1x64x32xf32>
    %19 = vector.shape_cast %18 : vector<1x64x32xf32> to vector<64x32xf32>
    %cst_14 = arith.constant dense<0.000000e+00> : vector<64x256xf32>
    %20 = tpu.matmul %19, %17, %cst_14 {dimension_numbers = #tpu.dot_dimension_numbers<[1], [0], [0], [1], [0, 0, 1, 1], [], []>} : vector<64x32xf32>, vector<32x256xf32>, vector<64x256xf32> -> vector<64x256xf32>
    %21 = vector.extract_strided_slice %20 {offsets = [0, 0], sizes = [64, 128], strides = [1, 1]} : vector<64x256xf32> to vector<64x128xf32>
    %22 = vector.extract_strided_slice %20 {offsets = [0, 128], sizes = [64, 128], strides = [1, 1]} : vector<64x256xf32> to vector<64x128xf32>
    %23 = vector.extract_strided_slice %12 {offsets = [0, 128], sizes = [32, 128], strides = [1, 1]} : vector<32x640xf32> to vector<32x128xf32>
    %24 = vector.extract_strided_slice %14 {offsets = [0, 128], sizes = [32, 128], strides = [1, 1]} : vector<32x640xf32> to vector<32x128xf32>
    %25 = tpu.concatenate %23, %24 in 1 : vector<32x128xf32>, vector<32x128xf32> -> vector<32x256xf32>
    %c1 = arith.constant 1 : index
    %c0_15 = arith.constant 0 : index
    %c0_16 = arith.constant 0 : index
    %26 = vector.load %arg5[%c1, %c0_15, %c0_16] : memref<5x64x32xf32, #tpu.memory_space<vmem>>, vector<1x64x32xf32>
    %27 = vector.shape_cast %26 : vector<1x64x32xf32> to vector<64x32xf32>
    %cst_17 = arith.constant dense<0.000000e+00> : vector<64x256xf32>
    %28 = tpu.matmul %27, %25, %cst_17 {dimension_numbers = #tpu.dot_dimension_numbers<[1], [0], [0], [1], [0, 0, 1, 1], [], []>} : vector<64x32xf32>, vector<32x256xf32>, vector<64x256xf32> -> vector<64x256xf32>
    %29 = vector.extract_strided_slice %28 {offsets = [0, 0], sizes = [64, 128], strides = [1, 1]} : vector<64x256xf32> to vector<64x128xf32>
    %30 = arith.addf %21, %29 : vector<64x128xf32>
    %31 = vector.extract_strided_slice %28 {offsets = [0, 128], sizes = [64, 128], strides = [1, 1]} : vector<64x256xf32> to vector<64x128xf32>
    %32 = arith.addf %22, %31 : vector<64x128xf32>
    %33 = vector.extract_strided_slice %12 {offsets = [0, 256], sizes = [32, 128], strides = [1, 1]} : vector<32x640xf32> to vector<32x128xf32>
    %34 = vector.extract_strided_slice %14 {offsets = [0, 256], sizes = [32, 128], strides = [1, 1]} : vector<32x640xf32> to vector<32x128xf32>
    %35 = tpu.concatenate %33, %34 in 1 : vector<32x128xf32>, vector<32x128xf32> -> vector<32x256xf32>
    %c2 = arith.constant 2 : index
    %c0_18 = arith.constant 0 : index
    %c0_19 = arith.constant 0 : index
    %36 = vector.load %arg5[%c2, %c0_18, %c0_19] : memref<5x64x32xf32, #tpu.memory_space<vmem>>, vector<1x64x32xf32>
    %37 = vector.shape_cast %36 : vector<1x64x32xf32> to vector<64x32xf32>
    %cst_20 = arith.constant dense<0.000000e+00> : vector<64x256xf32>
    %38 = tpu.matmul %37, %35, %cst_20 {dimension_numbers = #tpu.dot_dimension_numbers<[1], [0], [0], [1], [0, 0, 1, 1], [], []>} : vector<64x32xf32>, vector<32x256xf32>, vector<64x256xf32> -> vector<64x256xf32>
    %39 = vector.extract_strided_slice %38 {offsets = [0, 0], sizes = [64, 128], strides = [1, 1]} : vector<64x256xf32> to vector<64x128xf32>
    %40 = arith.addf %30, %39 : vector<64x128xf32>
    %41 = vector.extract_strided_slice %38 {offsets = [0, 128], sizes = [64, 128], strides = [1, 1]} : vector<64x256xf32> to vector<64x128xf32>
    %42 = arith.addf %32, %41 : vector<64x128xf32>
    %43 = vector.extract_strided_slice %12 {offsets = [0, 384], sizes = [32, 128], strides = [1, 1]} : vector<32x640xf32> to vector<32x128xf32>
    %44 = vector.extract_strided_slice %14 {offsets = [0, 384], sizes = [32, 128], strides = [1, 1]} : vector<32x640xf32> to vector<32x128xf32>
    %45 = tpu.concatenate %43, %44 in 1 : vector<32x128xf32>, vector<32x128xf32> -> vector<32x256xf32>
    %c3 = arith.constant 3 : index
    %c0_21 = arith.constant 0 : index
    %c0_22 = arith.constant 0 : index
    %46 = vector.load %arg5[%c3, %c0_21, %c0_22] : memref<5x64x32xf32, #tpu.memory_space<vmem>>, vector<1x64x32xf32>
    %47 = vector.shape_cast %46 : vector<1x64x32xf32> to vector<64x32xf32>
    %cst_23 = arith.constant dense<0.000000e+00> : vector<64x256xf32>
    %48 = tpu.matmul %47, %45, %cst_23 {dimension_numbers = #tpu.dot_dimension_numbers<[1], [0], [0], [1], [0, 0, 1, 1], [], []>} : vector<64x32xf32>, vector<32x256xf32>, vector<64x256xf32> -> vector<64x256xf32>
    %49 = vector.extract_strided_slice %48 {offsets = [0, 0], sizes = [64, 128], strides = [1, 1]} : vector<64x256xf32> to vector<64x128xf32>
    %50 = arith.addf %40, %49 : vector<64x128xf32>
    %51 = vector.extract_strided_slice %48 {offsets = [0, 128], sizes = [64, 128], strides = [1, 1]} : vector<64x256xf32> to vector<64x128xf32>
    %52 = arith.addf %42, %51 : vector<64x128xf32>
    %53 = vector.extract_strided_slice %12 {offsets = [0, 512], sizes = [32, 128], strides = [1, 1]} : vector<32x640xf32> to vector<32x128xf32>
    %54 = vector.extract_strided_slice %14 {offsets = [0, 512], sizes = [32, 128], strides = [1, 1]} : vector<32x640xf32> to vector<32x128xf32>
    %55 = tpu.concatenate %53, %54 in 1 : vector<32x128xf32>, vector<32x128xf32> -> vector<32x256xf32>
    %c4 = arith.constant 4 : index
    %c0_24 = arith.constant 0 : index
    %c0_25 = arith.constant 0 : index
    %56 = vector.load %arg5[%c4, %c0_24, %c0_25] : memref<5x64x32xf32, #tpu.memory_space<vmem>>, vector<1x64x32xf32>
    %57 = vector.shape_cast %56 : vector<1x64x32xf32> to vector<64x32xf32>
    %cst_26 = arith.constant dense<0.000000e+00> : vector<64x256xf32>
    %58 = tpu.matmul %57, %55, %cst_26 {dimension_numbers = #tpu.dot_dimension_numbers<[1], [0], [0], [1], [0, 0, 1, 1], [], []>} : vector<64x32xf32>, vector<32x256xf32>, vector<64x256xf32> -> vector<64x256xf32>
    %59 = vector.extract_strided_slice %58 {offsets = [0, 0], sizes = [64, 128], strides = [1, 1]} : vector<64x256xf32> to vector<64x128xf32>
    %60 = arith.addf %50, %59 : vector<64x128xf32>
    %61 = vector.extract_strided_slice %58 {offsets = [0, 128], sizes = [64, 128], strides = [1, 1]} : vector<64x256xf32> to vector<64x128xf32>
    %62 = arith.addf %52, %61 : vector<64x128xf32>
    %c0_27 = arith.constant 0 : index
    %c0_28 = arith.constant 0 : index
    %63 = vector.load %arg8[%c0_27, %c0_28] : memref<1x128xf32, #tpu.memory_space<vmem>>, vector<1x128xf32>
    %64 = vector.broadcast %63 : vector<1x128xf32> to vector<64x128xf32>
    %65 = arith.mulf %60, %64 : vector<64x128xf32>
    %c0_29 = arith.constant 0 : index
    %c0_30 = arith.constant 0 : index
    %66 = vector.load %arg9[%c0_29, %c0_30] : memref<1x128xf32, #tpu.memory_space<vmem>>, vector<1x128xf32>
    %67 = vector.broadcast %66 : vector<1x128xf32> to vector<64x128xf32>
    %68 = arith.addf %65, %67 : vector<64x128xf32>
    %cst_31 = arith.constant 0.000000e+00 : f32
    %69 = vector.broadcast %cst_31 : f32 to vector<64x128xf32>
    %70 = arith.maximumf %68, %69 : vector<64x128xf32>
    %71 = arith.truncf %70 : vector<64x128xf32> to vector<64x128xbf16>
    %c0_32 = arith.constant 0 : index
    %c0_33 = arith.constant 0 : index
    %72 = vector.load %arg4[%c0_32, %c0_33] : memref<128x640xbf16, #tpu.memory_space<vmem>>, vector<128x640xbf16>
    %cst_34 = arith.constant dense<0.000000e+00> : vector<64x640xf32>
    %73 = tpu.matmul %71, %72, %cst_34 {dimension_numbers = #tpu.dot_dimension_numbers<[1], [0], [0], [1], [0, 0, 1, 1], [], []>} : vector<64x128xbf16>, vector<128x640xbf16>, vector<64x640xf32> -> vector<64x640xf32>
    %74 = tpu.iota {dimensions = array<i32: 0>} : vector<64x1xi32>
    %c32_i32 = arith.constant 32 : i32
    %c0_i32 = arith.constant 0 : i32
    %75 = arith.cmpi eq, %c32_i32, %c0_i32 : i32
    %c1_i32 = arith.constant 1 : i32
    %76 = arith.select %75, %c1_i32, %c32_i32 : i32
    %77 = vector.broadcast %76 : i32 to vector<64x1xi32>
    %78 = arith.remsi %74, %77 : vector<64x1xi32>
    %c0_i32_35 = arith.constant 0 : i32
    %79 = vector.broadcast %c0_i32_35 : i32 to vector<64x1xi32>
    %80 = arith.cmpi ne, %78, %79 : vector<64x1xi32>
    %c0_i32_36 = arith.constant 0 : i32
    %81 = vector.broadcast %c0_i32_36 : i32 to vector<64x1xi32>
    %82 = arith.cmpi slt, %78, %81 : vector<64x1xi32>
    %c0_i32_37 = arith.constant 0 : i32
    %83 = arith.cmpi slt, %76, %c0_i32_37 : i32
    %84 = vector.broadcast %83 : i1 to vector<64x1xi1>
    %85 = vector.broadcast %84 : vector<64x1xi1> to vector<64x1xi1>
    %86 = arith.xori %82, %85 : vector<64x1xi1>
    %87 = arith.andi %86, %80 : vector<64x1xi1>
    %88 = vector.broadcast %76 : i32 to vector<64x1xi32>
    %89 = arith.addi %78, %88 : vector<64x1xi32>
    %90 = arith.select %87, %89, %78 : vector<64x1xi1>, vector<64x1xi32>
    %91 = vector.extract_strided_slice %73 {offsets = [0, 256], sizes = [64, 128], strides = [1, 1]} : vector<64x640xf32> to vector<64x128xf32>
    %92 = vector.extract_strided_slice %73 {offsets = [0, 0], sizes = [64, 128], strides = [1, 1]} : vector<64x640xf32> to vector<64x128xf32>
    %c62_i32 = arith.constant 62 : i32
    %93 = tpu.dynamic_rotate %92 by %c62_i32 dim 0 : vector<64x128xf32>, i32 -> vector<64x128xf32>
    %c30_i32 = arith.constant 30 : i32
    %94 = vector.broadcast %c30_i32 : i32 to vector<64x1xi32>
    %95 = arith.cmpi slt, %90, %94 : vector<64x1xi32>
    %cst_38 = arith.constant 0.000000e+00 : f32
    %96 = vector.shape_cast %95 : vector<64x1xi1> to vector<64x1xi1>
    %97 = vector.broadcast %96 : vector<64x1xi1> to vector<64x128xi1>
    %98 = vector.broadcast %cst_38 : f32 to vector<64x128xf32>
    %99 = arith.select %97, %93, %98 : vector<64x128xi1>, vector<64x128xf32>
    %100 = arith.addf %91, %99 : vector<64x128xf32>
    %101 = vector.extract_strided_slice %73 {offsets = [0, 128], sizes = [64, 128], strides = [1, 1]} : vector<64x640xf32> to vector<64x128xf32>
    %c63_i32 = arith.constant 63 : i32
    %102 = tpu.dynamic_rotate %101 by %c63_i32 dim 0 : vector<64x128xf32>, i32 -> vector<64x128xf32>
    %c31_i32 = arith.constant 31 : i32
    %103 = vector.broadcast %c31_i32 : i32 to vector<64x1xi32>
    %104 = arith.cmpi slt, %90, %103 : vector<64x1xi32>
    %cst_39 = arith.constant 0.000000e+00 : f32
    %105 = vector.shape_cast %104 : vector<64x1xi1> to vector<64x1xi1>
    %106 = vector.broadcast %105 : vector<64x1xi1> to vector<64x128xi1>
    %107 = vector.broadcast %cst_39 : f32 to vector<64x128xf32>
    %108 = arith.select %106, %102, %107 : vector<64x128xi1>, vector<64x128xf32>
    %109 = arith.addf %100, %108 : vector<64x128xf32>
    %110 = vector.extract_strided_slice %73 {offsets = [0, 384], sizes = [64, 128], strides = [1, 1]} : vector<64x640xf32> to vector<64x128xf32>
    %c1_i32_40 = arith.constant 1 : i32
    %111 = tpu.dynamic_rotate %110 by %c1_i32_40 dim 0 : vector<64x128xf32>, i32 -> vector<64x128xf32>
    %c1_i32_41 = arith.constant 1 : i32
    %112 = vector.broadcast %c1_i32_41 : i32 to vector<64x1xi32>
    %113 = arith.cmpi sge, %90, %112 : vector<64x1xi32>
    %cst_42 = arith.constant 0.000000e+00 : f32
    %114 = vector.shape_cast %113 : vector<64x1xi1> to vector<64x1xi1>
    %115 = vector.broadcast %114 : vector<64x1xi1> to vector<64x128xi1>
    %116 = vector.broadcast %cst_42 : f32 to vector<64x128xf32>
    %117 = arith.select %115, %111, %116 : vector<64x128xi1>, vector<64x128xf32>
    %118 = arith.addf %109, %117 : vector<64x128xf32>
    %119 = vector.extract_strided_slice %73 {offsets = [0, 512], sizes = [64, 128], strides = [1, 1]} : vector<64x640xf32> to vector<64x128xf32>
    %c2_i32 = arith.constant 2 : i32
    %120 = tpu.dynamic_rotate %119 by %c2_i32 dim 0 : vector<64x128xf32>, i32 -> vector<64x128xf32>
    %c2_i32_43 = arith.constant 2 : i32
    %121 = vector.broadcast %c2_i32_43 : i32 to vector<64x1xi32>
    %122 = arith.cmpi sge, %90, %121 : vector<64x1xi32>
    %cst_44 = arith.constant 0.000000e+00 : f32
    %123 = vector.shape_cast %122 : vector<64x1xi1> to vector<64x1xi1>
    %124 = vector.broadcast %123 : vector<64x1xi1> to vector<64x128xi1>
    %125 = vector.broadcast %cst_44 : f32 to vector<64x128xf32>
    %126 = arith.select %124, %120, %125 : vector<64x128xi1>, vector<64x128xf32>
    %127 = arith.addf %118, %126 : vector<64x128xf32>
    %128 = arith.addf %127, %62 : vector<64x128xf32>
    %c0_45 = arith.constant 0 : index
    %c0_46 = arith.constant 0 : index
    %129 = vector.load %arg10[%c0_45, %c0_46] : memref<1x128xf32, #tpu.memory_space<vmem>>, vector<1x128xf32>
    %130 = vector.broadcast %129 : vector<1x128xf32> to vector<64x128xf32>
    %131 = arith.addf %128, %130 : vector<64x128xf32>
    %c0_47 = arith.constant 0 : index
    %c0_48 = arith.constant 0 : index
    %132 = vector.load %arg11[%c0_47, %c0_48] : memref<64x128xf32, #tpu.memory_space<vmem>>, vector<64x128xf32>
    tpu.vector_store %arg11[%c0_47, %c0_48], %131 {strides = array<i32>} : memref<64x128xf32, #tpu.memory_space<vmem>>, vector<64x128xf32>,
    return
  }
  func.func @transform_0(%arg0: i32) -> (i32, i32) {
    %c0_i32 = arith.constant 0 : i32
    %c0_i32_0 = arith.constant 0 : i32
    return %arg0, %c0_i32 : i32, i32
  }
  func.func @transform_1(%arg0: i32) -> (i32, i32) {
    %c0_i32 = arith.constant 0 : i32
    %c0_i32_0 = arith.constant 0 : i32
    %c0_i32_1 = arith.constant 0 : i32
    return %c0_i32, %c0_i32_0 : i32, i32
  }
  func.func @transform_2(%arg0: i32) -> (i32, i32) {
    %c0_i32 = arith.constant 0 : i32
    %c0_i32_0 = arith.constant 0 : i32
    %c0_i32_1 = arith.constant 0 : i32
    return %c0_i32, %c0_i32_0 : i32, i32
  }
  func.func @transform_3(%arg0: i32) -> (i32, i32) {
    %c0_i32 = arith.constant 0 : i32
    %c0_i32_0 = arith.constant 0 : i32
    %c0_i32_1 = arith.constant 0 : i32
    return %c0_i32, %c0_i32_0 : i32, i32
  }
  func.func @transform_4(%arg0: i32) -> (i32, i32, i32) {
    %c0_i32 = arith.constant 0 : i32
    %c0_i32_0 = arith.constant 0 : i32
    %c0_i32_1 = arith.constant 0 : i32
    %c0_i32_2 = arith.constant 0 : i32
    return %c0_i32, %c0_i32_0, %c0_i32_1 : i32, i32, i32
  }
  func.func @transform_5(%arg0: i32) -> (i32, i32) {
    %c0_i32 = arith.constant 0 : i32
    %c0_i32_0 = arith.constant 0 : i32
    %c0_i32_1 = arith.constant 0 : i32
    return %c0_i32, %c0_i32_0 : i32, i32
  }
  func.func @transform_6(%arg0: i32) -> (i32, i32) {
    %c0_i32 = arith.constant 0 : i32
    %c0_i32_0 = arith.constant 0 : i32
    %c0_i32_1 = arith.constant 0 : i32
    return %c0_i32, %c0_i32_0 : i32, i32
  }
  func.func @transform_7(%arg0: i32) -> (i32, i32) {
    %c0_i32 = arith.constant 0 : i32
    %c0_i32_0 = arith.constant 0 : i32
    %c0_i32_1 = arith.constant 0 : i32
    return %c0_i32, %c0_i32_0 : i32, i32
  }
  func.func @transform_8(%arg0: i32) -> (i32, i32) {
    %c0_i32 = arith.constant 0 : i32
    %c0_i32_0 = arith.constant 0 : i32
    %c0_i32_1 = arith.constant 0 : i32
    return %c0_i32, %c0_i32_0 : i32, i32
  }
  func.func @transform_9(%arg0: i32) -> (i32, i32) {
    %c0_i32 = arith.constant 0 : i32
    %c0_i32_0 = arith.constant 0 : i32
    %c0_i32_1 = arith.constant 0 : i32
    return %c0_i32, %c0_i32_0 : i32, i32
  }
  func.func @transform_10(%arg0: i32) -> (i32, i32) {
    %c0_i32 = arith.constant 0 : i32
    %c0_i32_0 = arith.constant 0 : i32
    return %arg0, %c0_i32 : i32, i32
  }
}

</mosaic_0001>

<bundles_post_ra>
// kernel: tile.38
= control target key start
LH: loop header
LB: loop body
LE: loop exit
PB: predicated region body
PF: predicated region fallthrough
CT: control target
= control target key end

     0   :  { %s40_s0 = inlined_call_operand.vmem [shape: f32[4], index: 0, kind: input, shape index: {}]   ;;  %s41_s1 = inlined_call_operand.vmem [shape: f32[32,4], index: 1, kind: output, shape index: {}]  }
   0x1   :  { %v4_v0 = vld [vmem:[%s40_s0] ss:$0 sm:$0xff] }
   0x2   :  { %5 = vst [vmem:[%s41_s1] sm:$0xff] %v4_v0  ;;  %12 = vst [vmem:[%s41_s1 + $0x8] sm:$0xff] %v4_v0 }
   0x3   :  { %13 = vst [vmem:[%s41_s1 + $0x10] sm:$0xff] %v4_v0  ;;  %14 = vst [vmem:[%s41_s1 + $0x18] sm:$0xff] %v4_v0 }

// kernel: tile.39
= control target key start
LH: loop header
LB: loop body
LE: loop exit
PB: predicated region body
PF: predicated region fallthrough
CT: control target
= control target key end

     0   :  { %s259_s10 = smov 124   ;;  %s260_s11 = smov 116   ;;  %vm3_vm0 = vcmask 31744   ;;  %vm9_vm1 = vcmask 1048544   ;;  %vm15_vm2 = vcmask 1015744   ;;  %vm21_vm3 = vcmask 982944   ;;  %s399_s0 = inlined_call_operand.vmem [shape: f32[32,4], index: 0, kind: input, shape index: {}]   ;;  %s400_s1 = inlined_call_operand.vmem [shape: f32[1,128], index: 1, kind: output, shape index: {}]  }
   0x1   :  { %v197_v0 = vld [vmem:[%s399_s0 + $0x1f] sm:$0x1]   ;;  %v199_v1 = vld [vmem:[%s399_s0 + $0x1d] sm:$0x1]   ;;  %v198_v2 = vld [vmem:[%s399_s0 + $0x1e] sm:$0x1]  }
   0x2   :  { %7 = vrot.lane.b32.xlu0 %v197_v0, %s259_s10  ;;  %19 = vrot.lane.b32.xlu1 %v199_v1, %s260_s11  ;;  %v200_v3 = vld [vmem:[%s399_s0 + $0x1c] sm:$0x1]   ;;  %s261_s16 = smov 120   ;;  %s262_s17 = smov 112   ;;  %v201_v4 = vld [vmem:[%s399_s0 + $0x1b] sm:$0x1]  }
   0x3   :  { %v202_v5 = vld [vmem:[%s399_s0 + $0x1a] sm:$0x1]   ;;  %s263_s22 = smov 108   ;;  %s264_s23 = smov 104   ;;  %v203_v6 = vld [vmem:[%s399_s0 + $0x19] sm:$0x1]  }
   0x4   :  { %v204_v7 = vld [vmem:[%s399_s0 + $0x18] sm:$0x1]   ;;  %s265_s28 = smov 100   ;;  %s266_s29 = smov 96   ;;  %v205_v8 = vld [vmem:[%s399_s0 + $0x17] sm:$0x1]  }
   0x5   :  { %v206_v9 = vld [vmem:[%s399_s0 + $0x16] sm:$0x1]   ;;  %v2_v10 = vld [vmem:[%s399_s0] sm:$0x1]   ;;  %s267_s7 = smov 92   ;;  %s268_s8 = smov 88  }
   0x6   :  { %13 = vrot.lane.b32.xlu0 %v198_v2, %s261_s16  ;;  %25 = vrot.lane.b32.xlu1 %v200_v3, %s262_s17  ;;  %4 = vst.msk [vmem:[#allocation0] sm:$0x1] %vm3_vm0, %v2_v10   ;;  %v207_v11 = vld [vmem:[%s399_s0 + $0x15] sm:$0x1]   ;;  %v208_v12 = vld [vmem:[%s399_s0 + $0x14] sm:$0x1]  }
   0x7   :  { %s269_s13 = smov 84   ;;  %s270_s14 = smov 80   ;;  %v209_v13 = vld [vmem:[%s399_s0 + $0x13] sm:$0x1]   ;;  %v210_v14 = vld [vmem:[%s399_s0 + $0x12] sm:$0x1]  }
   0x8   :  { %s271_s19 = smov 76   ;;  %s272_s20 = smov 72   ;;  %v211_v15 = vld [vmem:[%s399_s0 + $0x11] sm:$0x1]   ;;  %v212_v16 = vld [vmem:[%s399_s0 + $0x10] sm:$0x1]  }
   0x9   :  { %s273_s25 = smov 68   ;;  %s274_s26 = smov 64   ;;  %v213_v17 = vld [vmem:[%s399_s0 + $0xf] sm:$0x1]   ;;  %v214_v18 = vld [vmem:[%s399_s0 + $0xe] sm:$0x1]  }
   0xa   :  { %31 = vrot.lane.b32.xlu0 %v201_v4, %s263_s22  ;;  %37 = vrot.lane.b32.xlu1 %v202_v5, %s264_s23  ;;  %s275_s2 = smov 60   ;;  %s276_s3 = smov 56   ;;  %v215_v19 = vld [vmem:[%s399_s0 + $0xd] sm:$0x1]   ;;  %v216_v20 = vld [vmem:[%s399_s0 + $0xc] sm:$0x1]  }
   0xb   :  { %s278_s9 = smov 48   ;;  %v217_v21 = vld [vmem:[%s399_s0 + $0xb] sm:$0x1]   ;;  %v218_v22 = vld [vmem:[%s399_s0 + $0xa] sm:$0x1]   ;;  %s280_s15 = smov 40  }
   0xc   :  { %v219_v23 = vld [vmem:[%s399_s0 + $0x9] sm:$0x1]   ;;  %v220_v24 = vld [vmem:[%s399_s0 + $0x8] sm:$0x1]   ;;  %s282_s21 = smov 32   ;;  %s284_s27 = smov 24  }
   0xd   :  { %v221_v25 = vld [vmem:[%s399_s0 + $0x7] sm:$0x1]   ;;  %v222_v26 = vld [vmem:[%s399_s0 + $0x6] sm:$0x1]   ;;  %v223_v27 = vld [vmem:[%s399_s0 + $0x5] sm:$0x1]  }
   0xe   :  { %43 = vrot.lane.b32.xlu0 %v203_v6, %s265_s28  ;;  %49 = vrot.lane.b32.xlu1 %v204_v7, %s266_s29  ;;  %v224_v28 = vld [vmem:[%s399_s0 + $0x4] sm:$0x1]   ;;  %s286_s4 = smov 16   ;;  %v225_v29 = vld [vmem:[%s399_s0 + $0x3] sm:$0x1]   ;;  %s288_s10 = smov 8  }
   0xf   :  { %v226_v30 = vld [vmem:[%s399_s0 + $0x2] sm:$0x1]   ;;  %v227_v31 = vld [vmem:[%s399_s0 + $0x1] sm:$0x1]   ;;  %s289_s0 = smov 4   ;;  %vm27_vm4 = vcmask 950144  }
  0x10   :  { %vm33_vm5 = vcmask 917344   ;;  %vm39_vm6 = vcmask 884544   ;;  %vm45_vm7 = vcmask 851744   ;;  %vm51_vm8 = vcmask 818944  }
  0x11   :  { %vm57_vm9 = vcmask 786144   ;;  %vm63_vm10 = vcmask 753344   ;;  %vm69_vm11 = vcmask 720544   ;;  %vm75_vm12 = vcmask 687744  }
  0x12   :  { %55 = vrot.lane.b32.xlu0 %v205_v8, %s267_s7  ;;  %61 = vrot.lane.b32.xlu1 %v206_v9, %s268_s8  ;;  %s277_s8 = smov 52   ;;  %vm81_vm13 = vcmask 654944   ;;  %vm87_vm14 = vcmask 622144   ;;  %vm93_vm15 = vcmask 589344   ;;  %vm99_vm0 = vcmask 556544  }
  0x16   :  { %67 = vrot.lane.b32.xlu0 %v207_v11, %s269_s13  ;;  %73 = vrot.lane.b32.xlu1 %v208_v12, %s270_s14  ;;  %s279_s14 = smov 44  }
  0x1a   :  { %79 = vrot.lane.b32.xlu0 %v209_v13, %s271_s19  ;;  %85 = vrot.lane.b32.xlu1 %v210_v14, %s272_s20  ;;  %s281_s20 = smov 36  }
  0x1e   :  { %91 = vrot.lane.b32.xlu0 %v211_v15, %s273_s25  ;;  %97 = vrot.lane.b32.xlu1 %v212_v16, %s274_s26  ;;  %s283_s26 = smov 28  }
  0x22   :  { %103 = vrot.lane.b32.xlu0 %v213_v17, %s275_s2  ;;  %109 = vrot.lane.b32.xlu1 %v214_v18, %s276_s3  ;;  %s285_s3 = smov 20  }
  0x26   :  { %115 = vrot.lane.b32.xlu0 %v215_v19, %s277_s8  ;;  %121 = vrot.lane.b32.xlu1 %v216_v20, %s278_s9  ;;  %s287_s9 = smov 12  }
  0x2a   :  { %127 = vrot.lane.b32.xlu0 %v217_v21, %s279_s14  ;;  %133 = vrot.lane.b32.xlu1 %v218_v22, %s280_s15 }
  0x2e   :  { %139 = vrot.lane.b32.xlu0 %v219_v23, %s281_s20  ;;  %145 = vrot.lane.b32.xlu1 %v220_v24, %s282_s21 }
  0x32   :  { %151 = vrot.lane.b32.xlu0 %v221_v25, %s283_s26  ;;  %157 = vrot.lane.b32.xlu1 %v222_v26, %s284_s27 }
  0x36   :  { %163 = vrot.lane.b32.xlu0 %v223_v27, %s285_s3  ;;  %169 = vrot.lane.b32.xlu1 %v224_v28, %s286_s4 }
  0x3a   :  { %175 = vrot.lane.b32.xlu0 %v225_v29, %s287_s9  ;;  %181 = vrot.lane.b32.xlu1 %v226_v30, %s288_s10 }
  0x3e   :  { %187 = vrot.lane.b32.xlu0 %v227_v31, %s289_s0 }
  0x74   :  { %v8_v32 = vpop.permute.xlu0 %7   ;;  %v20_v33 = vpop.permute.xlu1 %19  }
  0x75   :  { %10 = vst.msk [vmem:[#allocation0] sm:$0x1] %vm9_vm1, %v8_v32   ;;  %vm105_vm1 = vcmask 523744  }
  0x78   :  { %v14_v34 = vpop.permute.xlu0 %13   ;;  %v26_v35 = vpop.permute.xlu1 %25  }
  0x79   :  { %16 = vst.msk [vmem:[#allocation0] sm:$0x1] %vm15_vm2, %v14_v34   ;;  %vm111_vm2 = vcmask 490944  }
  0x7a   :  { %22 = vst.msk [vmem:[#allocation0] sm:$0x1] %vm21_vm3, %v20_v33   ;;  %vm117_vm3 = vcmask 458144  }
  0x7b   :  { %28 = vst.msk [vmem:[#allocation0] sm:$0x1] %vm27_vm4, %v26_v35   ;;  %vm123_vm4 = vcmask 425344  }
  0x7c   :  { %v32_v36 = vpop.permute.xlu0 %31   ;;  %v38_v37 = vpop.permute.xlu1 %37  }
  0x7d   :  { %34 = vst.msk [vmem:[#allocation0] sm:$0x1] %vm33_vm5, %v32_v36   ;;  %vm129_vm5 = vcmask 392544  }
  0x7e   :  { %40 = vst.msk [vmem:[#allocation0] sm:$0x1] %vm39_vm6, %v38_v37   ;;  %vm135_vm6 = vcmask 359744  }
  0x80   :  { %v44_v38 = vpop.permute.xlu0 %43   ;;  %v50_v39 = vpop.permute.xlu1 %49  }
  0x81   :  { %46 = vst.msk [vmem:[#allocation0] sm:$0x1] %vm45_vm7, %v44_v38   ;;  %vm141_vm7 = vcmask 326944  }
  0x82   :  { %52 = vst.msk [vmem:[#allocation0] sm:$0x1] %vm51_vm8, %v50_v39   ;;  %vm147_vm8 = vcmask 294144  }
  0x84   :  { %v56_v40 = vpop.permute.xlu0 %55   ;;  %v62_v41 = vpop.permute.xlu1 %61  }
  0x85   :  { %58 = vst.msk [vmem:[#allocation0] sm:$0x1] %vm57_vm9, %v56_v40   ;;  %vm153_vm9 = vcmask 261344  }
  0x86   :  { %64 = vst.msk [vmem:[#allocation0] sm:$0x1] %vm63_vm10, %v62_v41   ;;  %vm159_vm10 = vcmask 228544  }
  0x88   :  { %v68_v42 = vpop.permute.xlu0 %67   ;;  %v74_v43 = vpop.permute.xlu1 %73  }
  0x89   :  { %70 = vst.msk [vmem:[#allocation0] sm:$0x1] %vm69_vm11, %v68_v42   ;;  %vm165_vm11 = vcmask 195744  }
  0x8a   :  { %76 = vst.msk [vmem:[#allocation0] sm:$0x1] %vm75_vm12, %v74_v43   ;;  %vm171_vm12 = vcmask 162944  }
  0x8c   :  { %v80_v44 = vpop.permute.xlu0 %79   ;;  %v86_v45 = vpop.permute.xlu1 %85  }
  0x8d   :  { %82 = vst.msk [vmem:[#allocation0] sm:$0x1] %vm81_vm13, %v80_v44   ;;  %vm177_vm13 = vcmask 130144  }
  0x8e   :  { %88 = vst.msk [vmem:[#allocation0] sm:$0x1] %vm87_vm14, %v86_v45   ;;  %vm183_vm14 = vcmask 97344  }
  0x90   :  { %v92_v46 = vpop.permute.xlu0 %91   ;;  %v98_v47 = vpop.permute.xlu1 %97  }
  0x91   :  { %94 = vst.msk [vmem:[#allocation0] sm:$0x1] %vm93_vm15, %v92_v46   ;;  %vm189_vm15 = vcmask 64544  }
  0x92   :  { %100 = vst.msk [vmem:[#allocation0] sm:$0x1] %vm99_vm0, %v98_v47  }
  0x94   :  { %v104_v48 = vpop.permute.xlu0 %103   ;;  %v110_v49 = vpop.permute.xlu1 %109  }
  0x95   :  { %106 = vst.msk [vmem:[#allocation0] sm:$0x1] %vm105_vm1, %v104_v48  }
  0x96   :  { %112 = vst.msk [vmem:[#allocation0] sm:$0x1] %vm111_vm2, %v110_v49  }
  0x98   :  { %v116_v50 = vpop.permute.xlu0 %115   ;;  %v122_v51 = vpop.permute.xlu1 %121  }
  0x99   :  { %118 = vst.msk [vmem:[#allocation0] sm:$0x1] %vm117_vm3, %v116_v50  }
  0x9a   :  { %124 = vst.msk [vmem:[#allocation0] sm:$0x1] %vm123_vm4, %v122_v51  }
  0x9c   :  { %v128_v52 = vpop.permute.xlu0 %127   ;;  %v134_v53 = vpop.permute.xlu1 %133  }
  0x9d   :  { %130 = vst.msk [vmem:[#allocation0] sm:$0x1] %vm129_vm5, %v128_v52  }
  0x9e   :  { %136 = vst.msk [vmem:[#allocation0] sm:$0x1] %vm135_vm6, %v134_v53  }
  0xa0   :  { %v140_v54 = vpop.permute.xlu0 %139   ;;  %v146_v55 = vpop.permute.xlu1 %145  }
  0xa1   :  { %142 = vst.msk [vmem:[#allocation0] sm:$0x1] %vm141_vm7, %v140_v54  }
  0xa2   :  { %148 = vst.msk [vmem:[#allocation0] sm:$0x1] %vm147_vm8, %v146_v55  }
  0xa4   :  { %v152_v56 = vpop.permute.xlu0 %151   ;;  %v158_v57 = vpop.permute.xlu1 %157  }
  0xa5   :  { %154 = vst.msk [vmem:[#allocation0] sm:$0x1] %vm153_vm9, %v152_v56  }
  0xa6   :  { %160 = vst.msk [vmem:[#allocation0] sm:$0x1] %vm159_vm10, %v158_v57  }
  0xa8   :  { %v164_v58 = vpop.permute.xlu0 %163   ;;  %v170_v59 = vpop.permute.xlu1 %169  }
  0xa9   :  { %166 = vst.msk [vmem:[#allocation0] sm:$0x1] %vm165_vm11, %v164_v58  }
  0xaa   :  { %172 = vst.msk [vmem:[#allocation0] sm:$0x1] %vm171_vm12, %v170_v59  }
  0xac   :  { %v176_v60 = vpop.permute.xlu0 %175   ;;  %v182_v61 = vpop.permute.xlu1 %181  }
  0xad   :  { %178 = vst.msk [vmem:[#allocation0] sm:$0x1] %vm177_vm13, %v176_v60  }
  0xae   :  { %184 = vst.msk [vmem:[#allocation0] sm:$0x1] %vm183_vm14, %v182_v61  }
  0xb0   :  { %v188_v62 = vpop.permute.xlu0 %187  }
  0xb1   :  { %190 = vst.msk [vmem:[#allocation0] sm:$0x1] %vm189_vm15, %v188_v62  }
  0xb8   :  { %v194_v63 = vld [vmem:[#allocation0] sm:$0x1] }
  0xb9   :  { %196 = vst [vmem:[%s400_s1] sm:$0x1] %v194_v63 }

// kernel: tile.28
= control target key start
LH: loop header
LB: loop body
LE: loop exit
PB: predicated region body
PF: predicated region fallthrough
CT: control target
= control target key end

     0   :  { %s28_s0 = inlined_call_operand.vmem [shape: f32[8], index: 0, kind: input, shape index: {}]   ;;  %s29_s1 = inlined_call_operand.vmem [shape: f32[16,8], index: 1, kind: output, shape index: {}]  }
   0x1   :  { %v4_v0 = vld [vmem:[%s28_s0] ss:$0 sm:$0xff] }
   0x2   :  { %5 = vst [vmem:[%s29_s1] sm:$0xff] %v4_v0  ;;  %8 = vst [vmem:[%s29_s1 + $0x8] sm:$0xff] %v4_v0 }

// kernel: tile.29
= control target key start
LH: loop header
LB: loop body
LE: loop exit
PB: predicated region body
PF: predicated region fallthrough
CT: control target
= control target key end

     0   :  { %s131_s10 = smov 120   ;;  %s132_s11 = smov 104   ;;  %vm3_vm0 = vcmask 64512   ;;  %vm9_vm1 = vcmask 1048512   ;;  %vm15_vm2 = vcmask 982912   ;;  %vm21_vm3 = vcmask 917312   ;;  %s207_s0 = inlined_call_operand.vmem [shape: f32[16,8], index: 0, kind: input, shape index: {}]   ;;  %s208_s1 = inlined_call_operand.vmem [shape: f32[1,128], index: 1, kind: output, shape index: {}]  }
   0x1   :  { %v101_v0 = vld [vmem:[%s207_s0 + $0xf] sm:$0x1]   ;;  %v103_v1 = vld [vmem:[%s207_s0 + $0xd] sm:$0x1]   ;;  %v102_v2 = vld [vmem:[%s207_s0 + $0xe] sm:$0x1]  }
   0x2   :  { %7 = vrot.lane.b32.xlu0 %v101_v0, %s131_s10  ;;  %19 = vrot.lane.b32.xlu1 %v103_v1, %s132_s11  ;;  %v104_v3 = vld [vmem:[%s207_s0 + $0xc] sm:$0x1]   ;;  %s133_s16 = smov 112   ;;  %s134_s17 = smov 96   ;;  %v105_v4 = vld [vmem:[%s207_s0 + $0xb] sm:$0x1]  }
   0x3   :  { %v106_v5 = vld [vmem:[%s207_s0 + $0xa] sm:$0x1]   ;;  %v2_v6 = vld [vmem:[%s207_s0] sm:$0x1]   ;;  %s135_s24 = smov 88   ;;  %s136_s25 = smov 80  }
   0x4   :  { %4 = vst.msk [vmem:[#allocation0] sm:$0x1] %vm3_vm0, %v2_v6   ;;  %v107_v7 = vld [vmem:[%s207_s0 + $0x9] sm:$0x1]   ;;  %v108_v8 = vld [vmem:[%s207_s0 + $0x8] sm:$0x1]  }
   0x5   :  { %s137_s30 = smov 72   ;;  %s138_s2 = smov 64   ;;  %v109_v9 = vld [vmem:[%s207_s0 + $0x7] sm:$0x1]   ;;  %v110_v10 = vld [vmem:[%s207_s0 + $0x6] sm:$0x1]  }
   0x6   :  { %13 = vrot.lane.b32.xlu0 %v102_v2, %s133_s16  ;;  %25 = vrot.lane.b32.xlu1 %v104_v3, %s134_s17  ;;  %s139_s7 = smov 56   ;;  %s140_s8 = smov 48   ;;  %v111_v11 = vld [vmem:[%s207_s0 + $0x5] sm:$0x1]   ;;  %v112_v12 = vld [vmem:[%s207_s0 + $0x4] sm:$0x1]  }
   0x7   :  { %s141_s13 = smov 40   ;;  %s142_s14 = smov 32   ;;  %v113_v13 = vld [vmem:[%s207_s0 + $0x3] sm:$0x1]   ;;  %v114_v14 = vld [vmem:[%s207_s0 + $0x2] sm:$0x1]  }
   0x8   :  { %s143_s19 = smov 24   ;;  %s144_s20 = smov 16   ;;  %v115_v15 = vld [vmem:[%s207_s0 + $0x1] sm:$0x1]   ;;  %vm27_vm4 = vcmask 851712   ;;  %vm33_vm5 = vcmask 786112  }
   0x9   :  { %s145_s0 = smov 8   ;;  %vm39_vm6 = vcmask 720512   ;;  %vm45_vm7 = vcmask 654912   ;;  %vm51_vm8 = vcmask 589312   ;;  %vm57_vm9 = vcmask 523712  }
   0xa   :  { %31 = vrot.lane.b32.xlu0 %v105_v4, %s135_s24  ;;  %37 = vrot.lane.b32.xlu1 %v106_v5, %s136_s25  ;;  %vm63_vm10 = vcmask 458112   ;;  %vm69_vm11 = vcmask 392512   ;;  %vm75_vm12 = vcmask 326912   ;;  %vm81_vm13 = vcmask 261312  }
   0xb   :  { %vm87_vm14 = vcmask 195712   ;;  %vm93_vm15 = vcmask 130112  }
   0xe   :  { %43 = vrot.lane.b32.xlu0 %v107_v7, %s137_s30  ;;  %49 = vrot.lane.b32.xlu1 %v108_v8, %s138_s2 }
  0x12   :  { %55 = vrot.lane.b32.xlu0 %v109_v9, %s139_s7  ;;  %61 = vrot.lane.b32.xlu1 %v110_v10, %s140_s8 }
  0x16   :  { %67 = vrot.lane.b32.xlu0 %v111_v11, %s141_s13  ;;  %73 = vrot.lane.b32.xlu1 %v112_v12, %s142_s14 }
  0x1a   :  { %79 = vrot.lane.b32.xlu0 %v113_v13, %s143_s19  ;;  %85 = vrot.lane.b32.xlu1 %v114_v14, %s144_s20 }
  0x1e   :  { %91 = vrot.lane.b32.xlu0 %v115_v15, %s145_s0 }
  0x74   :  { %v8_v16 = vpop.permute.xlu0 %7   ;;  %v20_v17 = vpop.permute.xlu1 %19  }
  0x75   :  { %10 = vst.msk [vmem:[#allocation0] sm:$0x1] %vm9_vm1, %v8_v16  }
  0x78   :  { %v14_v18 = vpop.permute.xlu0 %13   ;;  %v26_v19 = vpop.permute.xlu1 %25  }
  0x79   :  { %16 = vst.msk [vmem:[#allocation0] sm:$0x1] %vm15_vm2, %v14_v18  }
  0x7a   :  { %22 = vst.msk [vmem:[#allocation0] sm:$0x1] %vm21_vm3, %v20_v17  }
  0x7b   :  { %28 = vst.msk [vmem:[#allocation0] sm:$0x1] %vm27_vm4, %v26_v19  }
  0x7c   :  { %v32_v20 = vpop.permute.xlu0 %31   ;;  %v38_v21 = vpop.permute.xlu1 %37  }
  0x7d   :  { %34 = vst.msk [vmem:[#allocation0] sm:$0x1] %vm33_vm5, %v32_v20  }
  0x7e   :  { %40 = vst.msk [vmem:[#allocation0] sm:$0x1] %vm39_vm6, %v38_v21  }
  0x80   :  { %v44_v22 = vpop.permute.xlu0 %43   ;;  %v50_v23 = vpop.permute.xlu1 %49  }
  0x81   :  { %46 = vst.msk [vmem:[#allocation0] sm:$0x1] %vm45_vm7, %v44_v22  }
  0x82   :  { %52 = vst.msk [vmem:[#allocation0] sm:$0x1] %vm51_vm8, %v50_v23  }
  0x84   :  { %v56_v24 = vpop.permute.xlu0 %55   ;;  %v62_v25 = vpop.permute.xlu1 %61  }
  0x85   :  { %58 = vst.msk [vmem:[#allocation0] sm:$0x1] %vm57_vm9, %v56_v24  }
  0x86   :  { %64 = vst.msk [vmem:[#allocation0] sm:$0x1] %vm63_vm10, %v62_v25  }
  0x88   :  { %v68_v26 = vpop.permute.xlu0 %67   ;;  %v74_v27 = vpop.permute.xlu1 %73  }
  0x89   :  { %70 = vst.msk [vmem:[#allocation0] sm:$0x1] %vm69_vm11, %v68_v26  }
  0x8a   :  { %76 = vst.msk [vmem:[#allocation0] sm:$0x1] %vm75_vm12, %v74_v27  }
  0x8c   :  { %v80_v28 = vpop.permute.xlu0 %79   ;;  %v86_v29 = vpop.permute.xlu1 %85  }
  0x8d   :  { %82 = vst.msk [vmem:[#allocation0] sm:$0x1] %vm81_vm13, %v80_v28  }
  0x8e   :  { %88 = vst.msk [vmem:[#allocation0] sm:$0x1] %vm87_vm14, %v86_v29  }
  0x90   :  { %v92_v30 = vpop.permute.xlu0 %91  }
  0x91   :  { %94 = vst.msk [vmem:[#allocation0] sm:$0x1] %vm93_vm15, %v92_v30  }
  0x98   :  { %v98_v31 = vld [vmem:[#allocation0] sm:$0x1] }
  0x99   :  { %100 = vst [vmem:[%s208_s1] sm:$0x1] %v98_v31 }

// kernel: r_resblock_forward.1
= control target key start
LH: loop header
LB: loop body
LE: loop exit
PB: predicated region body
PF: predicated region fallthrough
CT: control target
= control target key end

     0   :  { %s3594_s13 = smov 0   ;;  %s4488_s0 = inlined_call_operand.vmem [shape: f32[128,128], index: 0, kind: input, shape index: {}]   ;;  %s4489_s1 = inlined_call_operand.vmem [shape: bf16[128,640], index: 1, kind: input, shape index: {}]   ;;  %s4490_s2 = inlined_call_operand.vmem [shape: bf16[128,640], index: 2, kind: input, shape index: {}]   ;;  %s4491_s3 = inlined_call_operand.vmem [shape: bf16[128,640], index: 3, kind: input, shape index: {}]   ;;  %s4492_s4 = inlined_call_operand.vmem [shape: f32[5,64,32], index: 4, kind: input, shape index: {}]   ;;  %s4493_s5 = inlined_call_operand.vmem [shape: f32[1,128], index: 5, kind: input, shape index: {}]   ;;  %s4494_s6 = inlined_call_operand.vmem [shape: f32[1,128], index: 6, kind: input, shape index: {}]   ;;  %s4495_s7 = inlined_call_operand.vmem [shape: f32[1,128], index: 7, kind: input, shape index: {}]   ;;  %s4496_s8 = inlined_call_operand.vmem [shape: f32[1,128], index: 8, kind: input, shape index: {}]   ;;  %s4497_s9 = inlined_call_operand.vmem [shape: f32[1,128], index: 9, kind: input, shape index: {}]   ;;  %s4498_s10 = inlined_call_operand.vmem [shape: f32[256,128], index: 10, kind: output, shape index: {}]  }
   0x1 LB: > { %s2943_s14 = sadd.s32 4294967295, %s3535_s13   ;;  %p2947_p0 = scmp.ge.s32.totalorder %s3535_s13, 1  ;;  %s3535_s13 = sphi %s3594_s13, %s20_s13  }
   0x2   : > { %p313_p1 = scmp.lt.s32.totalorder %s3535_s13, 5 }
   0x4   : > { %p314_p2 = pnand %p2947_p0, %p313_p1 }
   0x5   : > { %v3361_v0 = vld [vmem:[%s4489_s1 + $0x4] ss:$20 sps:$4 sm:$0xff] (!%p314_p2)   ;;  %v3363_v1 = vld [vmem:[%s4489_s1 + $0xc] ss:$20 sps:$4 sm:$0xff] (!%p314_p2)   ;;  %v3537_v2 = vmov (!%p314_p2), 0   ;;  %s2948_s25 = sshll.u32 (!%p314_p2), %s2943_s14, 2 }
   0x6   : > { %317 = sbr.rel (%p314_p2) target bundleno = 920 (0x398), region = 60  ;;  %686 = vmatprep.mubr.bf16.mxu0 (!%p314_p2), %v3537_v2  ;;  %739 = vmatprep.mubr.bf16.mxu1 (!%p314_p2), %v3537_v2  ;;  %v3365_v3 = vld [vmem:[%s4489_s1] ss:$20 sps:$4 sm:$0xff] (!%p314_p2)   ;;  %v3366_v4 = vld [vmem:[%s4489_s1 + $0x8] ss:$20 sps:$4 sm:$0xff] (!%p314_p2)   ;;  %p352_p3 = scmp.lt.s32.totalorder (!%p314_p2), %s2948_s25, 15 }
   0x7   : > { %654 = vmatprep.subr.bf16.mxu0 (!%p314_p2), %v3361_v0  ;;  %707 = vmatprep.subr.bf16.mxu1 (!%p314_p2), %v3363_v1  ;;  %v3367_v5 = vld [vmem:[%s4489_s1 + $0x2c] ss:$20 sps:$4 sm:$0xff] (!%p314_p2)   ;;  %v3369_v6 = vld [vmem:[%s4489_s1 + $0x34] ss:$20 sps:$4 sm:$0xff] (!%p314_p2)   ;;  %v3372_v8 = vld [vmem:[%s4489_s1 + $0x30] ss:$20 sps:$4 sm:$0xff] (!%p314_p2)  }
   0x8   : > { %655 = vmatpush1.bf16.msra.mxu0 (!%p314_p2), %v3365_v3  ;;  %708 = vmatpush1.bf16.msra.mxu1 (!%p314_p2), %v3366_v4  ;;  %v3371_v7 = vld [vmem:[%s4489_s1 + $0x28] ss:$20 sps:$4 sm:$0xff] (!%p314_p2)   ;;  %v3377_v11 = vld [vmem:[%s4489_s1 + $0x50] ss:$20 sps:$4 sm:$0xff] (!%p314_p2)   ;;  %v3378_v12 = vld [vmem:[%s4489_s1 + $0x58] ss:$20 sps:$4 sm:$0xff] (!%p314_p2)  }
   0x9   : > { %656 = vmatprep.subr.bf16.mxu0 (!%p314_p2), %v3367_v5  ;;  %709 = vmatprep.subr.bf16.mxu1 (!%p314_p2), %v3369_v6  ;;  %v3373_v9 = vld [vmem:[%s4489_s1 + $0x54] ss:$20 sps:$4 sm:$0xff] (!%p314_p2)   ;;  %v3375_v10 = vld [vmem:[%s4489_s1 + $0x5c] ss:$20 sps:$4 sm:$0xff] (!%p314_p2)   ;;  %v3381_v14 = vld [vmem:[%s4489_s1 + $0x84] ss:$20 sps:$4 sm:$0xff] (!%p314_p2)  }
   0xa   : > { %v3379_v13 = vld [vmem:[%s4489_s1 + $0x7c] ss:$20 sps:$4 sm:$0xff] (!%p314_p2)   ;;  %v3383_v15 = vld [vmem:[%s4489_s1 + $0x78] ss:$20 sps:$4 sm:$0xff] (!%p314_p2)   ;;  %v3384_v16 = vld [vmem:[%s4489_s1 + $0x80] ss:$20 sps:$4 sm:$0xff] (!%p314_p2)  }
   0xb   : > { %v3385_v17 = vld [vmem:[%s4489_s1 + $0xa4] ss:$20 sps:$4 sm:$0xff] (!%p314_p2)   ;;  %v3387_v18 = vld [vmem:[%s4489_s1 + $0xac] ss:$20 sps:$4 sm:$0xff] (!%p314_p2)   ;;  %v3390_v20 = vld [vmem:[%s4489_s1 + $0xa8] ss:$20 sps:$4 sm:$0xff] (!%p314_p2)  }
   0xc   : > { %657 = vmatpush1.bf16.msra.mxu0 (!%p314_p2), %v3371_v7  ;;  %710 = vmatpush1.bf16.msra.mxu1 (!%p314_p2), %v3372_v8  ;;  %v3389_v19 = vld [vmem:[%s4489_s1 + $0xa0] ss:$20 sps:$4 sm:$0xff] (!%p314_p2)   ;;  %v3395_v23 = vld [vmem:[%s4489_s1 + $0xc8] ss:$20 sps:$4 sm:$0xff] (!%p314_p2)   ;;  %v3396_v24 = vld [vmem:[%s4489_s1 + $0xd0] ss:$20 sps:$4 sm:$0xff] (!%p314_p2)  }
   0xd   : > { %658 = vmatprep.subr.bf16.mxu0 %v3373_v9  ;;  %711 = vmatprep.subr.bf16.mxu1 %v3375_v10  ;;  %s4504_s25 = smov (!%p352_p3, %s2948_s25), 15  ;;  %v3391_v21 = vld [vmem:[%s4489_s1 + $0xcc] ss:$20 sps:$4 sm:$0xff]   ;;  %v3393_v22 = vld [vmem:[%s4489_s1 + $0xd4] ss:$20 sps:$4 sm:$0xff]   ;;  %vm1228_vm0 = vcmask 261120  }
   0xe   : > { %s2949_s21 = sshll.u32 %s4504_s25, 3  ;;  %v3397_v25 = vld [vmem:[%s4489_s1 + $0xf4] ss:$20 sps:$4 sm:$0xff]   ;;  %v3399_v26 = vld [vmem:[%s4489_s1 + $0xfc] ss:$20 sps:$4 sm:$0xff]   ;;  %s2950_s27 = sshll.u32 %s2943_s14, 3 }
   0xf   : > { %s3675_s29 = scalar_lea.vmem %s4488_s0, %s2949_s21  ;;  %v2952_v29 = vld [vmem:[%s4493_s5] ss:$0 sm:$0xff]  ;;  %v3401_v31 = vld [vmem:[%s4489_s1 + $0xf0] ss:$20 sps:$4 sm:$0xff]   ;;  %v3402_v34 = vld [vmem:[%s4489_s1 + $0xf8] ss:$20 sps:$4 sm:$0xff]  }
  0x10   : > { %659 = vmatpush1.bf16.msra.mxu0 %v3377_v11  ;;  %712 = vmatpush1.bf16.msra.mxu1 %v3378_v12  ;;  %v3690_v27 = vld [vmem:[%s3675_s29] sm:$0xff]  ;;  %v3693_v28 = vld [vmem:[%s3675_s29 + $0x8] sm:$0xff]  ;;  %v3403_v35 = vld [vmem:[%s4489_s1 + $0x11c] ss:$20 sps:$4 sm:$0xff]   ;;  %p358_p4 = scmp.lt.s32.totalorder %s2950_s27, 31 }
  0x11   : > { %660 = vmatprep.subr.bf16.mxu0 %v3379_v13  ;;  %713 = vmatprep.subr.bf16.mxu1 %v3381_v14  ;;  %v2953_v30 = vld [vmem:[%s4494_s6] ss:$0 sm:$0xff]  ;;  %v375_v32 = vmul.f32 %v2952_v29, %v3690_v27  ;;  %v376_v33 = vmul.f32 %v2952_v29, %v3693_v28  ;;  %v3405_v36 = vld [vmem:[%s4489_s1 + $0x124] ss:$20 sps:$4 sm:$0xff]   ;;  %v3414_v49 = vld [vmem:[%s4490_s2 + $0x28] ss:$20 sps:$4 sm:$0xff]  }
  0x12   : > { %v3407_v39 = vld [vmem:[%s4489_s1 + $0x118] ss:$20 sps:$4 sm:$0xff]   ;;  %v3408_v42 = vld [vmem:[%s4489_s1 + $0x120] ss:$20 sps:$4 sm:$0xff]   ;;  %v3409_v43 = vld [vmem:[%s4489_s1 + $0x10] ss:$20 sps:$4 sm:$0xff]  }
  0x13   : > { %v386_v37 = vadd.f32 %v2953_v30, %v375_v32  ;;  %v387_v38 = vadd.f32 %v2953_v30, %v376_v33  ;;  %v3412_v44 = vld [vmem:[%s4490_s2 + $0x4] ss:$20 sps:$4 sm:$0xff]   ;;  %v3410_v46 = vld [vmem:[%s4490_s2] ss:$20 sps:$4 sm:$0xff]   ;;  %v3421_v57 = vld [vmem:[%s4489_s1 + $0x88] ss:$20 sps:$4 sm:$0xff]  }
  0x14   : > { %661 = vmatpush1.bf16.msra.mxu0 %v3383_v15  ;;  %714 = vmatpush1.bf16.msra.mxu1 %v3384_v16  ;;  %v3413_v47 = vld [vmem:[%s4489_s1 + $0x38] ss:$20 sps:$4 sm:$0xff]   ;;  %v3417_v50 = vld [vmem:[%s4489_s1 + $0x60] ss:$20 sps:$4 sm:$0xff]   ;;  %v3418_v56 = vld [vmem:[%s4490_s2 + $0x50] ss:$20 sps:$4 sm:$0xff]  }
  0x15   : > { %662 = vmatprep.subr.bf16.mxu0 %v3385_v17  ;;  %715 = vmatprep.subr.bf16.mxu1 %v3387_v18  ;;  %v390_v40 = vmax.f32 %v386_v37, 0.0  ;;  %v391_v41 = vmax.f32 %v387_v38, 0.0  ;;  %v3416_v48 = vld [vmem:[%s4490_s2 + $0x2c] ss:$20 sps:$4 sm:$0xff]   ;;  %v3420_v51 = vld [vmem:[%s4490_s2 + $0x54] ss:$20 sps:$4 sm:$0xff]   ;;  %v396_v17 = vpack.c.bf16 %v3693_v28, %v3690_v27 }
  0x16   : > { %v3746_v52 = vld [vmem:[%s3675_s29 + $0x10] sm:$0xff]  ;;  %v3749_v53 = vld [vmem:[%s3675_s29 + $0x18] sm:$0xff]  ;;  %v3432_v6 = vld [vmem:[%s4490_s2 + $0xcc] ss:$20 sps:$4 sm:$0xff]   ;;  %s4506_s27 = smov (!%p358_p4, %s2950_s27), 31 }
  0x17   : > { %v394_v45 = vpack.c.bf16 %v391_v41, %v390_v40  ;;  %v377_v54 = vmul.f32 %v2952_v29, %v3746_v52  ;;  %v378_v55 = vmul.f32 %v2952_v29, %v3749_v53  ;;  %v3424_v60 = vld [vmem:[%s4490_s2 + $0x7c] ss:$20 sps:$4 sm:$0xff]   ;;  %v3422_v63 = vld [vmem:[%s4490_s2 + $0x78] ss:$20 sps:$4 sm:$0xff]   ;;  %v3426_v4 = vld [vmem:[%s4490_s2 + $0xa0] ss:$20 sps:$4 sm:$0xff]  }
  0x18   : > { %663 = vmatpush1.bf16.msra.mxu0 %v3389_v19  ;;  %716 = vmatpush1.bf16.msra.mxu1 %v3390_v20  ;;  %v3425_v0 = vld [vmem:[%s4489_s1 + $0xb0] ss:$20 sps:$4 sm:$0xff]   ;;  %v3429_v5 = vld [vmem:[%s4489_s1 + $0xd8] ss:$20 sps:$4 sm:$0xff]   ;;  %v3430_v7 = vld [vmem:[%s4490_s2 + $0xc8] ss:$20 sps:$4 sm:$0xff]  }
  0x19   : > { %664 = vmatprep.subr.bf16.mxu0 %v3391_v21  ;;  %717 = vmatprep.subr.bf16.mxu1 %v3393_v22  ;;  %v388_v58 = vadd.f32 %v2953_v30, %v377_v54  ;;  %v389_v59 = vadd.f32 %v2953_v30, %v378_v55  ;;  %v3428_v3 = vld [vmem:[%s4490_s2 + $0xa4] ss:$20 sps:$4 sm:$0xff]   ;;  %v3433_v8 = vld [vmem:[%s4489_s1 + $0x100] ss:$20 sps:$4 sm:$0xff]   ;;  %v3437_v11 = vld [vmem:[%s4489_s1 + $0x128] ss:$20 sps:$4 sm:$0xff]  }
  0x1a   : > { %v3436_v9 = vld [vmem:[%s4490_s2 + $0xf4] ss:$20 sps:$4 sm:$0xff]   ;;  %v3434_v10 = vld [vmem:[%s4490_s2 + $0xf0] ss:$20 sps:$4 sm:$0xff]   ;;  %v3438_v13 = vld [vmem:[%s4490_s2 + $0x118] ss:$20 sps:$4 sm:$0xff]  }
  0x1b   : > { %v392_v61 = vmax.f32 %v388_v58, 0.0  ;;  %v393_v62 = vmax.f32 %v389_v59, 0.0  ;;  %v3440_v12 = vld [vmem:[%s4490_s2 + $0x11c] ss:$20 sps:$4 sm:$0xff]   ;;  %v3443_v14 = vld [vmem:[%s4490_s2 + $0xc] ss:$20 sps:$4 sm:$0xff]  }
  0x1c   : > { %665 = vmatpush1.bf16.msra.mxu0 %v3395_v23  ;;  %718 = vmatpush1.bf16.msra.mxu1 %v3396_v24  ;;  %v3465_v15 = vld [vmem:[%s4490_s2 + $0x10] ss:$20 sps:$4 sm:$0xff]   ;;  %v3441_v16 = vld [vmem:[%s4490_s2 + $0x8] ss:$20 sps:$4 sm:$0xff]   ;;  %v3466_v19 = vld [vmem:[%s4490_s2 + $0x38] ss:$20 sps:$4 sm:$0xff]   ;;  %v397_v24 = vpack.c.bf16 %v3749_v53, %v3746_v52 }
  0x1d   : > { %666 = vmatprep.subr.bf16.mxu0 %v3397_v25  ;;  %719 = vmatprep.subr.bf16.mxu1 %v3399_v26  ;;  %v395_v1 = vpack.c.bf16 %v393_v62, %v392_v61  ;;  %v3446_v18 = vld [vmem:[%s4490_s2 + $0x34] ss:$20 sps:$4 sm:$0xff]   ;;  %v3444_v20 = vld [vmem:[%s4490_s2 + $0x30] ss:$20 sps:$4 sm:$0xff]   ;;  %v3447_v23 = vld [vmem:[%s4490_s2 + $0x58] ss:$20 sps:$4 sm:$0xff]  }
  0x1e   : > { %v3449_v21 = vld [vmem:[%s4490_s2 + $0x5c] ss:$20 sps:$4 sm:$0xff]   ;;  %v3467_v22 = vld [vmem:[%s4490_s2 + $0x60] ss:$20 sps:$4 sm:$0xff]   ;;  %v3452_v25 = vld [vmem:[%s4490_s2 + $0x84] ss:$20 sps:$4 sm:$0xff]  }
  0x1f   : > { %v3468_v26 = vld [vmem:[%s4490_s2 + $0x88] ss:$20 sps:$4 sm:$0xff]   ;;  %v3450_v27 = vld [vmem:[%s4490_s2 + $0x80] ss:$20 sps:$4 sm:$0xff]   ;;  %v3469_v29 = vld [vmem:[%s4490_s2 + $0xb0] ss:$20 sps:$4 sm:$0xff]  }
  0x20   : > { %667 = vmatpush1.bf16.msra.mxu0 %v3401_v31  ;;  %720 = vmatpush1.bf16.msra.mxu1 %v3402_v34  ;;  %v3455_v28 = vld [vmem:[%s4490_s2 + $0xac] ss:$20 sps:$4 sm:$0xff]   ;;  %v3453_v30 = vld [vmem:[%s4490_s2 + $0xa8] ss:$20 sps:$4 sm:$0xff]   ;;  %v3456_v33 = vld [vmem:[%s4490_s2 + $0xd0] ss:$20 sps:$4 sm:$0xff]  }
  0x21   : > { %668 = vmatprep.subr.bf16.mxu0 %v3403_v35  ;;  %721 = vmatprep.subr.bf16.mxu1 %v3405_v36  ;;  %v3458_v31 = vld [vmem:[%s4490_s2 + $0xd4] ss:$20 sps:$4 sm:$0xff]   ;;  %v3470_v32 = vld [vmem:[%s4490_s2 + $0xd8] ss:$20 sps:$4 sm:$0xff]   ;;  %v3461_v34 = vld [vmem:[%s4490_s2 + $0xfc] ss:$20 sps:$4 sm:$0xff]  }
  0x22   : > { %v3471_v35 = vld [vmem:[%s4490_s2 + $0x100] ss:$20 sps:$4 sm:$0xff]   ;;  %v3459_v36 = vld [vmem:[%s4490_s2 + $0xf8] ss:$20 sps:$4 sm:$0xff]   ;;  %v3472_v38 = vld [vmem:[%s4490_s2 + $0x128] ss:$20 sps:$4 sm:$0xff]  }
  0x23   : > { %v3464_v37 = vld [vmem:[%s4490_s2 + $0x124] ss:$20 sps:$4 sm:$0xff]   ;;  %v3538_v40 = vmov 0.0   ;;  %s2951_s14 = sshll.u32 %s4506_s27, 3 }
  0x24   : > { %669 = vmatpush1.bf16.msra.mxu0 %v3407_v39  ;;  %722 = vmatpush1.bf16.msra.mxu1 %v3408_v42  ;;  %v3462_v39 = vld [vmem:[%s4490_s2 + $0x120] ss:$20 sps:$4 sm:$0xff]   ;;  %s4442_s12 = scalar_lea.vmem %s4498_s10, %s2951_s14 }
  0x25   : > { %3183 = vmatprep.subr.bf16.mxu0 %v3409_v43  ;;  %1065 = vmatprep.subr.bf16.mxu1 %v3412_v44 }
  0x27   : > { %687 = vmatmul.mubr.bf16.vlgmr.msra.gmra.mrb[0].mxu0 %v394_v45  ;;  %740 = vmatmul.mubr.bf16.vlgmr.msra.gmra.mrb[0].mxu1 %v394_v45 }
  0x28   : > { %3184 = vmatpush3.bf16.msra.mxu0 %v3409_v43  ;;  %1066 = vmatpush1.bf16.msra.mxu1 %v3410_v46 }
  0x29   : > { %3185 = vmatprep.subr.bf16.mxu0 %v3413_v47  ;;  %1067 = vmatprep.subr.bf16.mxu1 %v3416_v48 }
  0x2a   : > { %696 = vmatprep.mubr.bf16.mxu0 %v3537_v2  ;;  %749 = vmatprep.mubr.bf16.mxu1 %v3537_v2 }
  0x2c   : > { %3186 = vmatpush3.bf16.msra.mxu0 %v3413_v47  ;;  %1068 = vmatpush1.bf16.msra.mxu1 %v3414_v49 }
  0x2d   : > { %3187 = vmatprep.subr.bf16.mxu0 %v3417_v50  ;;  %1069 = vmatprep.subr.bf16.mxu1 %v3420_v51 }
  0x2f   : > { %697 = vmatmul.mubr.bf16.gmra.mrb[4].mxu0 %v395_v1  ;;  %750 = vmatmul.mubr.bf16.gmra.mrb[4].mxu1 %v395_v1 }
  0x30   : > { %3188 = vmatpush3.bf16.msra.mxu0 %v3417_v50  ;;  %1070 = vmatpush1.bf16.msra.mxu1 %v3418_v56 }
  0x31   : > { %3189 = vmatprep.subr.bf16.mxu0 %v3421_v57  ;;  %1071 = vmatprep.subr.bf16.mxu1 %v3424_v60 }
  0x32   : > { %3199 = vmatprep.mubr.bf16.mxu0 %v394_v45  ;;  %1097 = vmatprep.mubr.bf16.mxu1 %v3537_v2 }
  0x34   : > { %3190 = vmatpush3.bf16.msra.mxu0 %v3421_v57  ;;  %1072 = vmatpush1.bf16.msra.mxu1 %v3422_v63 }
  0x35   : > { %3191 = vmatprep.subr.bf16.mxu0 %v3425_v0  ;;  %1073 = vmatprep.subr.bf16.mxu1 %v3428_v3 }
  0x38   : > { %3192 = vmatpush3.bf16.msra.mxu0 %v3425_v0  ;;  %1074 = vmatpush1.bf16.msra.mxu1 %v3426_v4 }
  0x39   : > { %3193 = vmatprep.subr.bf16.mxu0 %v3429_v5  ;;  %1075 = vmatprep.subr.bf16.mxu1 %v3432_v6 }
  0x3c   : > { %3194 = vmatpush3.bf16.msra.mxu0 %v3429_v5  ;;  %1076 = vmatpush1.bf16.msra.mxu1 %v3430_v7 }
  0x3d   : > { %3195 = vmatprep.subr.bf16.mxu0 %v3433_v8  ;;  %1077 = vmatprep.subr.bf16.mxu1 %v3436_v9 }
  0x40   : > { %3196 = vmatpush3.bf16.msra.mxu0 %v3433_v8  ;;  %1078 = vmatpush1.bf16.msra.mxu1 %v3434_v10 }
  0x41   : > { %3197 = vmatprep.subr.bf16.mxu0 %v3437_v11  ;;  %1079 = vmatprep.subr.bf16.mxu1 %v3440_v12 }
  0x44   : > { %3198 = vmatpush3.bf16.msra.mxu0 %v3437_v11  ;;  %1080 = vmatpush1.bf16.msra.mxu1 %v3438_v13 }
  0x45   : > { %1118 = vmatprep.subr.bf16.mxu0 %v3443_v14  ;;  %3203 = vmatprep.subr.bf16.mxu1 %v3465_v15 }
  0x47   : > { %3200 = vmatmul.mubr.bf16.vlgmr.msra.gmra.mrb[8].mxu0 %v395_v1  ;;  %1098 = vmatmul.mubr.bf16.vlgmr.msra.gmra.mrb[8].mxu1 %v396_v17 }
  0x48   : > { %1119 = vmatpush1.bf16.msra.mxu0 %v3441_v16  ;;  %1107 = vmatprep.mubr.bf16.mxu1 %v3537_v2 }
  0x49   : > { %1120 = vmatprep.subr.bf16.mxu0 %v3446_v18  ;;  %1150 = vmatprep.mubr.bf16.mxu0 %v3537_v2 }
  0x4a   : > { %3204 = vmatpush3.bf16.msra.mxu1 %v3465_v15 }
  0x4b   : > { %3205 = vmatprep.subr.bf16.mxu1 %v3466_v19 }
  0x4c   : > { %1121 = vmatpush1.bf16.msra.mxu0 %v3444_v20  ;;  %v1220_v20 = vld [vmem:[%s4492_s4] sm:$0xff] }
  0x4d   : > { %1122 = vmatprep.subr.bf16.mxu0 %v3449_v21  ;;  %v3475_v21 = vld [vmem:[%s4491_s3 + $0x4] ss:$20 sps:$4 sm:$0xff]  }
  0x4e   : > { %3206 = vmatpush3.bf16.msra.mxu1 %v3466_v19 }
  0x4f   : > { %1108 = vmatmul.mubr.bf16.gmra.mrb[12].mxu1 %v397_v24  ;;  %3207 = vmatprep.subr.bf16.mxu1 %v3467_v22 }
  0x50   : > { %1123 = vmatpush1.bf16.msra.mxu0 %v3447_v23  ;;  %3219 = vmatprep.mubr.bf16.mxu1 %v396_v17  ;;  %v3473_v23 = vld [vmem:[%s4491_s3] ss:$20 sps:$4 sm:$0xff]  }
  0x51   : > { %1124 = vmatprep.subr.bf16.mxu0 %v3452_v25  ;;  %v1221_v25 = vld [vmem:[%s4492_s4 + $0x8] sm:$0xff] }
  0x52   : > { %3208 = vmatpush3.bf16.msra.mxu1 %v3467_v22  ;;  %v3042_v22 = vld [vmem:[%s4492_s4 + $0x40] sm:$0xff] }
  0x53   : > { %3209 = vmatprep.subr.bf16.mxu1 %v3468_v26 }
  0x54   : > { %1125 = vmatpush1.bf16.msra.mxu0 %v3450_v27  ;;  %v3476_v27 = vld [vmem:[%s4491_s3 + $0x28] ss:$20 sps:$4 sm:$0xff]  }
  0x55   : > { %1126 = vmatprep.subr.bf16.mxu0 %v3455_v28  ;;  %v3481_v28 = vld [vmem:[%s4491_s3 + $0x54] ss:$20 sps:$4 sm:$0xff]  }
  0x56   : > { %3210 = vmatpush3.bf16.msra.mxu1 %v3468_v26  ;;  %v3043_v26 = vld [vmem:[%s4492_s4 + $0x48] sm:$0xff] }
  0x57   : > { %3211 = vmatprep.subr.bf16.mxu1 %v3469_v29 }
  0x58   : > { %1127 = vmatpush1.bf16.msra.mxu0 %v3453_v30  ;;  %v3044_v30 = vld [vmem:[%s4492_s4 + $0x50] sm:$0xff] }
  0x59   : > { %1128 = vmatprep.subr.bf16.mxu0 %v3458_v31  ;;  %v3479_v31 = vld [vmem:[%s4491_s3 + $0x50] ss:$20 sps:$4 sm:$0xff]  }
  0x5a   : > { %3212 = vmatpush3.bf16.msra.mxu1 %v3469_v29  ;;  %v1222_v29 = vld [vmem:[%s4492_s4 + $0x10] sm:$0xff] }
  0x5b   : > { %3213 = vmatprep.subr.bf16.mxu1 %v3470_v32 }
  0x5c   : > { %1129 = vmatpush1.bf16.msra.mxu0 %v3456_v33  ;;  %v1223_v33 = vld [vmem:[%s4492_s4 + $0x18] sm:$0xff] }
  0x5d   : > { %1130 = vmatprep.subr.bf16.mxu0 %v3461_v34  ;;  %v3045_v34 = vld [vmem:[%s4492_s4 + $0x58] sm:$0xff] }
  0x5e   : > { %3214 = vmatpush3.bf16.msra.mxu1 %v3470_v32  ;;  %v3484_v32 = vld [vmem:[%s4491_s3 + $0x7c] ss:$20 sps:$4 sm:$0xff]  }
  0x5f   : > { %3215 = vmatprep.subr.bf16.mxu1 %v3471_v35 }
  0x60   : > { %1131 = vmatpush1.bf16.msra.mxu0 %v3459_v36  ;;  %v3487_v36 = vld [vmem:[%s4491_s3 + $0xa4] ss:$20 sps:$4 sm:$0xff]  }
  0x61   : > { %1132 = vmatprep.subr.bf16.mxu0 %v3464_v37  ;;  %v1224_v37 = vld [vmem:[%s4492_s4 + $0x20] sm:$0xff] }
  0x62   : > { %3216 = vmatpush3.bf16.msra.mxu1 %v3471_v35  ;;  %v3482_v35 = vld [vmem:[%s4491_s3 + $0x78] ss:$20 sps:$4 sm:$0xff]  }
  0x63   : > { %3217 = vmatprep.subr.bf16.mxu1 %v3472_v38 }
  0x64   : > { %1133 = vmatpush1.bf16.msra.mxu0 %v3462_v39  ;;  %v3485_v39 = vld [vmem:[%s4491_s3 + $0xa0] ss:$20 sps:$4 sm:$0xff]  }
  0x66   : > { %3218 = vmatpush3.bf16.msra.mxu1 %v3472_v38  ;;  %v3046_v38 = vld [vmem:[%s4492_s4 + $0x60] sm:$0xff] }
  0x67   : > { %1151 = vmatmul.mubr.bf16.vlgmr.msra.gmra.mrb[12].mxu0 %v396_v17 }
  0x68   : > { %1160 = vmatprep.mubr.bf16.mxu0 %v3537_v2 }
  0x69   : > { %3220 = vmatmul.mubr.bf16.vlgmr.msra.gmra.mrb[16].mxu1 %v397_v24 }
  0x6a   : > { %1463 = vmatprep.mubr.f32.mxu1 %v3538_v40 }
  0x6f   : > { %1161 = vmatmul.mubr.bf16.gmra.mrb[16].mxu0 %v397_v24  ;;  %v3478_v24 = vld [vmem:[%s4491_s3 + $0x2c] ss:$20 sps:$4 sm:$0xff]  }
  0x70   : > { %1317 = vmatprep.mubr.f32.mxu0 %v3538_v40 }
  0xfa   : > { %v688_v41 = vpop.f32.mrb[0].mxu0  ;;  %v3885_v42 = vpop.f32.mrb[0].mxu1 }
  0xfb   : > { %v690_v43 = vpop.f32.mrb[1].mxu0  ;;  %v3887_v44 = vpop.f32.mrb[1].mxu1 }
  0xfc   : > { %v692_v45 = vpop.f32.mrb[2].mxu0  ;;  %v3889_v46 = vpop.f32.mrb[2].mxu1 }
  0xfd   : > { %v3249_v47 = vpack.c.bf16 %v692_v45, %v688_v41  ;;  %v694_v48 = vpop.f32.mrb[3].mxu0  ;;  %v3265_v49 = vpack.c.bf16 %v3889_v46, %v3885_v42  ;;  %v3893_v50 = vpop.f32.mrb[3].mxu1  ;;  %v1227_v42 = vld [vmem:[%s4492_s4 + $0x38] sm:$0xff] }
  0xfe   : > { %v3257_v51 = vpack.c.bf16 %v694_v48, %v690_v43  ;;  %v3273_v52 = vpack.c.bf16 %v3893_v50, %v3887_v44  ;;  %v1225_v48 = vld [vmem:[%s4492_s4 + $0x28] sm:$0xff]  ;;  %v3060_v44 = vld [vmem:[%s4492_s4 + $0x90] sm:$0xff]  ;;  %v3061_v50 = vld [vmem:[%s4492_s4 + $0x98] sm:$0xff] }
 0x102   : > { %v698_v53 = vpop.f32.mrb[4].mxu0  ;;  %v3897_v54 = vpop.f32.mrb[4].mxu1 }
 0x103   : > { %v700_v55 = vpop.f32.mrb[5].mxu0  ;;  %v3899_v56 = vpop.f32.mrb[5].mxu1 }
 0x104   : > { %v702_v57 = vpop.f32.mrb[6].mxu0  ;;  %v3901_v58 = vpop.f32.mrb[6].mxu1 }
 0x105   : > { %v3253_v59 = vpack.c.bf16 %v702_v57, %v698_v53  ;;  %v704_v60 = vpop.f32.mrb[7].mxu0  ;;  %v3269_v61 = vpack.c.bf16 %v3901_v58, %v3897_v54  ;;  %v3905_v62 = vpop.f32.mrb[7].mxu1  ;;  %v3059_v54 = vld [vmem:[%s4492_s4 + $0x88] sm:$0xff]  ;;  %v3064_v58 = vld [vmem:[%s4492_s4 + $0xb0] sm:$0xff] }
 0x106   : > { %v3261_v63 = vpack.c.bf16 %v704_v60, %v700_v55  ;;  %v3277_v0 = vpack.c.bf16 %v3905_v62, %v3899_v56  ;;  %v3047_v55 = vld [vmem:[%s4492_s4 + $0x68] sm:$0xff]  ;;  %v3074_v62 = vld [vmem:[%s4492_s4 + $0xc0] sm:$0xff] }
 0x107   : > { %v3063_v56 = vld [vmem:[%s4492_s4 + $0xa8] sm:$0xff] }
 0x11a   : > { %v3909_v1 = vpop.f32.mrb[8].mxu0  ;;  %v1099_v3 = vpop.f32.mrb[8].mxu1 }
 0x11b   : > { %v3911_v4 = vpop.f32.mrb[9].mxu0  ;;  %v1101_v5 = vpop.f32.mrb[9].mxu1 }
 0x11c   : > { %v3913_v6 = vpop.f32.mrb[10].mxu0  ;;  %v1103_v7 = vpop.f32.mrb[10].mxu1 }
 0x11d   : > { %v3285_v8 = vpack.c.bf16 %v3913_v6, %v3909_v1  ;;  %v3247_v9 = vpack.c.bf16 %v1103_v7, %v1099_v3  ;;  %v3917_v10 = vpop.f32.mrb[11].mxu0  ;;  %v1105_v11 = vpop.f32.mrb[11].mxu1  ;;  %v1226_v7 = vld [vmem:[%s4492_s4 + $0x30] sm:$0xff]  ;;  %v3078_v1 = vld [vmem:[%s4492_s4 + $0xe0] sm:$0xff]  ;;  %v3079_v6 = vld [vmem:[%s4492_s4 + $0xe8] sm:$0xff] }
 0x11e   : > { %v3281_v12 = vpack.c.bf16 %v3917_v10, %v3911_v4  ;;  %v3255_v13 = vpack.c.bf16 %v1105_v11, %v1101_v5  ;;  %v3076_v4 = vld [vmem:[%s4492_s4 + $0xd0] sm:$0xff]  ;;  %v3077_v10 = vld [vmem:[%s4492_s4 + $0xd8] sm:$0xff] }
 0x11f   : > { %3248 = vmatprep.subr.bf16.mxu0 %v3247_v9  ;;  %v3048_v9 = vld [vmem:[%s4492_s4 + $0x70] sm:$0xff] }
 0x120   : > { %3250 = vmatpush1.bf16.msra.mxu0 %v3249_v47  ;;  %3256 = vmatprep.subr.bf16.mxu1 %v3255_v13 }
 0x121   : > { %3258 = vmatpush1.bf16.msra.mxu1 %v3257_v51 }
 0x122   : > { %v1109_v14 = vpop.f32.mrb[12].mxu1 }
 0x123   : > { %v1111_v15 = vpop.f32.mrb[13].mxu1 }
 0x124   : > { %v1113_v16 = vpop.f32.mrb[14].mxu1 }
 0x125   : > { %v3251_v17 = vpack.c.bf16 %v1113_v16, %v1109_v14  ;;  %v1115_v18 = vpop.f32.mrb[15].mxu1 }
 0x126   : > { %v3259_v19 = vpack.c.bf16 %v1115_v18, %v1111_v15  ;;  %v3090_v18 = vld [vmem:[%s4492_s4 + $0x100] sm:$0xff] }
 0x127   : > { %3252 = vmatprep.subr.bf16.mxu0 %v3251_v17  ;;  %v3058_v17 = vld [vmem:[%s4492_s4 + $0x80] sm:$0xff] }
 0x128   : > { %3254 = vmatpush1.bf16.msra.mxu0 %v3253_v59  ;;  %3260 = vmatprep.subr.bf16.mxu1 %v3259_v19  ;;  %v3091_v19 = vld [vmem:[%s4492_s4 + $0x108] sm:$0xff] }
 0x129   : > { %3262 = vmatpush1.bf16.msra.mxu1 %v3261_v63  ;;  %2312 = vmatprep.subr.bf16.mxu0 %v3475_v21  ;;  %v3093_v21 = vld [vmem:[%s4492_s4 + $0x118] sm:$0xff] }
 0x12b   : > { %3034 = vmatmul.mubr.msk.f32.vlgmr.msra.gmra.mrb[20].mxu0 %vm1228_vm0, %v1220_v20  ;;  %v3092_v20 = vld [vmem:[%s4492_s4 + $0x110] sm:$0xff] }
 0x12c   : > { %3050 = vmatmul.mubr.msk.f32.vlgmr.msra.gmra.mrb[20].mxu1 %vm1228_vm0, %v3042_v22  ;;  %1323 = vmatprep.mubr.f32.mxu0 %v3538_v40  ;;  %v3094_v22 = vld [vmem:[%s4492_s4 + $0x120] sm:$0xff] }
 0x12d   : > { %1469 = vmatprep.mubr.f32.mxu1 %v3538_v40  ;;  %2313 = vmatpush1.bf16.msra.mxu0 %v3473_v23  ;;  %v3095_v23 = vld [vmem:[%s4492_s4 + $0x128] sm:$0xff] }
 0x12e   : > { %2314 = vmatprep.subr.bf16.mxu0 %v3478_v24  ;;  %v3096_v24 = vld [vmem:[%s4492_s4 + $0x130] sm:$0xff] }
 0x12f   : > { %3035 = vmatmul.mubr.msk.f32.gmra.mrb[22].mxu0 %vm1228_vm0, %v1221_v25  ;;  %v3097_v25 = vld [vmem:[%s4492_s4 + $0x138] sm:$0xff] }
 0x130   : > { %3051 = vmatmul.mubr.msk.f32.gmra.mrb[22].mxu1 %vm1228_vm0, %v3043_v26  ;;  %1329 = vmatprep.mubr.f32.mxu0 %v3538_v40  ;;  %v3490_v26 = vld [vmem:[%s4491_s3 + $0xcc] ss:$20 sps:$4 sm:$0xff]  }
 0x131   : > { %1475 = vmatprep.mubr.f32.mxu1 %v3538_v40  ;;  %2315 = vmatpush1.bf16.msra.mxu0 %v3476_v27  ;;  %v3488_v27 = vld [vmem:[%s4491_s3 + $0xc8] ss:$20 sps:$4 sm:$0xff]  }
 0x132   : > { %2316 = vmatprep.subr.bf16.mxu0 %v3481_v28  ;;  %v3491_v28 = vld [vmem:[%s4491_s3 + $0xf0] ss:$20 sps:$4 sm:$0xff]  }
 0x133   : > { %3036 = vmatmul.mubr.msk.f32.gmra.mrb[24].mxu0 %vm1228_vm0, %v1222_v29  ;;  %v3496_v29 = vld [vmem:[%s4491_s3 + $0x11c] ss:$20 sps:$4 sm:$0xff]  }
 0x134   : > { %3052 = vmatmul.mubr.msk.f32.gmra.mrb[24].mxu1 %vm1228_vm0, %v3044_v30  ;;  %1335 = vmatprep.mubr.f32.mxu0 %v3538_v40  ;;  %v3494_v30 = vld [vmem:[%s4491_s3 + $0x118] ss:$20 sps:$4 sm:$0xff]  }
 0x135   : > { %1481 = vmatprep.mubr.f32.mxu1 %v3538_v40  ;;  %2317 = vmatpush1.bf16.msra.mxu0 %v3479_v31  ;;  %v3499_v31 = vld [vmem:[%s4491_s3 + $0xc] ss:$20 sps:$4 sm:$0xff]  }
 0x136   : > { %2318 = vmatprep.subr.bf16.mxu0 %v3484_v32 }
 0x137   : > { %3037 = vmatmul.mubr.msk.f32.gmra.mrb[26].mxu0 %vm1228_vm0, %v1223_v33 }
 0x138   : > { %3053 = vmatmul.mubr.msk.f32.gmra.mrb[26].mxu1 %vm1228_vm0, %v3045_v34  ;;  %1341 = vmatprep.mubr.f32.mxu0 %v3538_v40 }
 0x139   : > { %1487 = vmatprep.mubr.f32.mxu1 %v3538_v40  ;;  %2319 = vmatpush1.bf16.msra.mxu0 %v3482_v35 }
 0x13a   : > { %v1152_v41 = vpop.f32.mrb[12].mxu0  ;;  %2320 = vmatprep.subr.bf16.mxu0 %v3487_v36 }
 0x13b   : > { %v1154_v43 = vpop.f32.mrb[13].mxu0  ;;  %3038 = vmatmul.mubr.msk.f32.gmra.mrb[28].mxu0 %vm1228_vm0, %v1224_v37 }
 0x13c   : > { %v1156_v45 = vpop.f32.mrb[14].mxu0  ;;  %3054 = vmatmul.mubr.msk.f32.gmra.mrb[28].mxu1 %vm1228_vm0, %v3046_v38  ;;  %v3999_v47 = vpop.f32.mrb[16].mxu1  ;;  %1347 = vmatprep.mubr.f32.mxu0 %v3538_v40 }
 0x13d   : > { %v3263_v51 = vpack.c.bf16 %v1156_v45, %v1152_v41  ;;  %v1158_v53 = vpop.f32.mrb[15].mxu0  ;;  %1493 = vmatprep.mubr.f32.mxu1 %v3538_v40  ;;  %v1205_v57 = vpop.f32.mrb[17].mxu1  ;;  %2321 = vmatpush1.bf16.msra.mxu0 %v3485_v39 }
 0x13e   : > { %v3271_v59 = vpack.c.bf16 %v1158_v53, %v1154_v43  ;;  %v4009_v60 = vpop.f32.mrb[18].mxu1  ;;  %2322 = vmatprep.subr.bf16.mxu0 %v3490_v26 }
 0x13f   : > { %3264 = vmatprep.subr.bf16.mxu1 %v3263_v51  ;;  %v3283_v63 = vpack.c.bf16 %v4009_v60, %v3999_v47  ;;  %v1208_v3 = vpop.f32.mrb[19].mxu1  ;;  %3039 = vmatmul.mubr.msk.f32.gmra.mrb[30].mxu0 %vm1228_vm0, %v1225_v48 }
 0x140   : > { %3055 = vmatmul.mubr.msk.f32.gmra.mrb[30].mxu1 %vm1228_vm0, %v3047_v55  ;;  %v3279_v5 = vpack.c.bf16 %v1208_v3, %v1205_v57  ;;  %1353 = vmatprep.mubr.f32.mxu0 %v3538_v40 }
 0x141   : > { %3266 = vmatpush1.bf16.msra.mxu1 %v3265_v49  ;;  %1499 = vmatprep.mubr.f32.mxu1 %v3538_v40  ;;  %v3049_v49 = vld [vmem:[%s4492_s4 + $0x78] sm:$0xff] }
 0x142   : > { %v1162_v11 = vpop.f32.mrb[16].mxu0  ;;  %2323 = vmatpush1.bf16.msra.mxu0 %v3488_v27  ;;  %v3503_v27 = vld [vmem:[%s4491_s3 + $0x58] ss:$20 sps:$4 sm:$0xff]  }
 0x143   : > { %v1164_v13 = vpop.f32.mrb[17].mxu0  ;;  %3040 = vmatmul.mubr.msk.f32.gmra.mrb[32].mxu0 %vm1228_vm0, %v1226_v7  ;;  %v4214_v7 = vld [vmem:[%s4496_s8] ss:$0 sm:$0xff] }
 0x144   : > { %v1166_v14 = vpop.f32.mrb[18].mxu0  ;;  %3056 = vmatmul.mubr.msk.f32.gmra.mrb[32].mxu1 %vm1228_vm0, %v3048_v9  ;;  %1359 = vmatprep.mubr.f32.mxu0 %v3538_v40 }
 0x145   : > { %v3267_v46 = vpack.c.bf16 %v1166_v14, %v1162_v11  ;;  %1505 = vmatprep.mubr.f32.mxu1 %v3538_v40  ;;  %v1168_v15 = vpop.f32.mrb[19].mxu0 }
 0x146   : > { %v3275_v16 = vpack.c.bf16 %v1168_v15, %v1164_v13 }
 0x147   : > { %3268 = vmatprep.subr.bf16.mxu1 %v3267_v46  ;;  %3041 = vmatmul.mubr.msk.f32.gmra.mrb[34].mxu0 %vm1228_vm0, %v1227_v42 }
 0x148   : > { %3057 = vmatmul.mubr.msk.f32.gmra.mrb[34].mxu1 %vm1228_vm0, %v3049_v49  ;;  %2344 = vmatprep.mubr.bf16.mxu0 %v3537_v2 }
 0x149   : > { %3270 = vmatpush1.bf16.msra.mxu1 %v3269_v61  ;;  %1625 = vmatprep.mubr.f32.mxu1 %v3538_v40  ;;  %v3065_v61 = vld [vmem:[%s4492_s4 + $0xb8] sm:$0xff] }
 0x14a   : > { %3272 = vmatprep.subr.bf16.mxu1 %v3271_v59  ;;  %v4206_v59 = vld [vmem:[%s4495_s7] ss:$0 sm:$0xff] }
 0x14c   : > { %3066 = vmatmul.mubr.msk.f32.vlgmr.msra.gmra.mrb[20].mxu1 %vm1228_vm0, %v3058_v17 }
 0x14d   : > { %3274 = vmatpush1.bf16.msra.mxu1 %v3273_v52  ;;  %1631 = vmatprep.mubr.f32.mxu1 %v3538_v40  ;;  %v3062_v52 = vld [vmem:[%s4492_s4 + $0xa0] sm:$0xff] }
 0x14e   : > { %3276 = vmatprep.subr.bf16.mxu1 %v3275_v16 }
 0x150   : > { %3067 = vmatmul.mubr.msk.f32.gmra.mrb[22].mxu1 %vm1228_vm0, %v3059_v54 }
 0x151   : > { %3278 = vmatpush1.bf16.msra.mxu1 %v3277_v0  ;;  %1637 = vmatprep.mubr.f32.mxu1 %v3538_v40  ;;  %v3075_v0 = vld [vmem:[%s4492_s4 + $0xc8] sm:$0xff] }
 0x152   : > { %3280 = vmatprep.subr.bf16.mxu1 %v3279_v5 }
 0x154   : > { %3068 = vmatmul.mubr.msk.f32.gmra.mrb[24].mxu1 %vm1228_vm0, %v3060_v44 }
 0x155   : > { %1643 = vmatprep.mubr.f32.mxu1 %v3538_v40 }
 0x158   : > { %3069 = vmatmul.mubr.msk.f32.gmra.mrb[26].mxu1 %vm1228_vm0, %v3061_v50 }
 0x159   : > { %1649 = vmatprep.mubr.f32.mxu1 %v3538_v40 }
 0x15c   : > { %3070 = vmatmul.mubr.msk.f32.gmra.mrb[28].mxu1 %vm1228_vm0, %v3062_v52 }
 0x15d   : > { %1655 = vmatprep.mubr.f32.mxu1 %v3538_v40 }
 0x160   : > { %3071 = vmatmul.mubr.msk.f32.gmra.mrb[30].mxu1 %vm1228_vm0, %v3063_v56 }
 0x161   : > { %1661 = vmatprep.mubr.f32.mxu1 %v3538_v40 }
 0x164   : > { %3072 = vmatmul.mubr.msk.f32.gmra.mrb[32].mxu1 %vm1228_vm0, %v3064_v58  ;;  %v3497_v58 = vld [vmem:[%s4491_s3 + $0x8] ss:$20 sps:$4 sm:$0xff]  }
 0x165   : > { %1667 = vmatprep.mubr.f32.mxu1 %v3538_v40 }
 0x168   : > { %3073 = vmatmul.mubr.msk.f32.gmra.mrb[34].mxu1 %vm1228_vm0, %v3065_v61 }
 0x169   : > { %1787 = vmatprep.mubr.f32.mxu1 %v3538_v40 }
 0x16c   : > { %3082 = vmatmul.mubr.msk.f32.vlgmr.msra.gmra.mrb[20].mxu1 %vm1228_vm0, %v3074_v62 }
 0x16d   : > { %3282 = vmatpush1.bf16.msra.mxu1 %v3281_v12  ;;  %1793 = vmatprep.mubr.f32.mxu1 %v3538_v40  ;;  %v3081_v12 = vld [vmem:[%s4492_s4 + $0xf8] sm:$0xff] }
 0x16e   : > { %3284 = vmatprep.subr.bf16.mxu1 %v3283_v63 }
 0x170   : > { %3083 = vmatmul.mubr.msk.f32.gmra.mrb[22].mxu1 %vm1228_vm0, %v3075_v0 }
 0x171   : > { %3286 = vmatpush1.bf16.msra.mxu1 %v3285_v8  ;;  %1799 = vmatprep.mubr.f32.mxu1 %v3538_v40  ;;  %v3080_v8 = vld [vmem:[%s4492_s4 + $0xf0] sm:$0xff] }
 0x174   : > { %3084 = vmatmul.mubr.msk.f32.gmra.mrb[24].mxu1 %vm1228_vm0, %v3076_v4  ;;  %v3502_v4 = vld [vmem:[%s4491_s3 + $0x34] ss:$20 sps:$4 sm:$0xff]  }
 0x175   : > { %1805 = vmatprep.mubr.f32.mxu1 %v3538_v40 }
 0x178   : > { %3085 = vmatmul.mubr.msk.f32.gmra.mrb[26].mxu1 %vm1228_vm0, %v3077_v10 }
 0x179   : > { %1811 = vmatprep.mubr.f32.mxu1 %v3538_v40 }
 0x17c   : > { %3086 = vmatmul.mubr.msk.f32.gmra.mrb[28].mxu1 %vm1228_vm0, %v3078_v1 }
 0x17d   : > { %1817 = vmatprep.mubr.f32.mxu1 %v3538_v40 }
 0x180   : > { %3087 = vmatmul.mubr.msk.f32.gmra.mrb[30].mxu1 %vm1228_vm0, %v3079_v6 }
 0x181   : > { %1823 = vmatprep.mubr.f32.mxu1 %v3538_v40 }
 0x184   : > { %3088 = vmatmul.mubr.msk.f32.gmra.mrb[32].mxu1 %vm1228_vm0, %v3080_v8 }
 0x185   : > { %1829 = vmatprep.mubr.f32.mxu1 %v3538_v40 }
 0x188   : > { %3089 = vmatmul.mubr.msk.f32.gmra.mrb[34].mxu1 %vm1228_vm0, %v3081_v12  ;;  %v3500_v12 = vld [vmem:[%s4491_s3 + $0x30] ss:$20 sps:$4 sm:$0xff]  }
 0x189   : > { %1949 = vmatprep.mubr.f32.mxu1 %v3538_v40 }
 0x18c   : > { %3098 = vmatmul.mubr.msk.f32.vlgmr.msra.gmra.mrb[20].mxu1 %vm1228_vm0, %v3090_v18 }
 0x18d   : > { %1955 = vmatprep.mubr.f32.mxu1 %v3538_v40 }
 0x190   : > { %3099 = vmatmul.mubr.msk.f32.gmra.mrb[22].mxu1 %vm1228_vm0, %v3091_v19 }
 0x191   : > { %1961 = vmatprep.mubr.f32.mxu1 %v3538_v40 }
 0x194   : > { %3100 = vmatmul.mubr.msk.f32.gmra.mrb[24].mxu1 %vm1228_vm0, %v3092_v20 }
 0x195   : > { %1967 = vmatprep.mubr.f32.mxu1 %v3538_v40 }
 0x198   : > { %3101 = vmatmul.mubr.msk.f32.gmra.mrb[26].mxu1 %vm1228_vm0, %v3093_v21  ;;  %v3505_v21 = vld [vmem:[%s4491_s3 + $0x5c] ss:$20 sps:$4 sm:$0xff]  }
 0x199   : > { %1973 = vmatprep.mubr.f32.mxu1 %v3538_v40 }
 0x19c   : > { %3102 = vmatmul.mubr.msk.f32.gmra.mrb[28].mxu1 %vm1228_vm0, %v3094_v22 }
 0x19d   : > { %1979 = vmatprep.mubr.f32.mxu1 %v3538_v40 }
 0x1a0   : > { %3103 = vmatmul.mubr.msk.f32.gmra.mrb[30].mxu1 %vm1228_vm0, %v3095_v23 }
 0x1a1   : > { %1985 = vmatprep.mubr.f32.mxu1 %v3538_v40 }
 0x1a4   : > { %3104 = vmatmul.mubr.msk.f32.gmra.mrb[32].mxu1 %vm1228_vm0, %v3096_v24 }
 0x1a5   : > { %1991 = vmatprep.mubr.f32.mxu1 %v3538_v40  ;;  %v3493_v40 = vld [vmem:[%s4491_s3 + $0xf4] ss:$20 sps:$4 sm:$0xff]  }
 0x1a6   : > { %2324 = vmatprep.subr.bf16.mxu0 %v3493_v40 }
 0x1a7   : > { %2325 = vmatpush1.bf16.msra.mxu0 %v3491_v28 }
 0x1a8   : > { %3105 = vmatmul.mubr.msk.f32.gmra.mrb[34].mxu1 %vm1228_vm0, %v3097_v25  ;;  %2326 = vmatprep.subr.bf16.mxu0 %v3496_v29 }
 0x1ab   : > { %2327 = vmatpush1.bf16.msra.mxu0 %v3494_v30  ;;  %v3508_v30 = vld [vmem:[%s4491_s3 + $0x84] ss:$20 sps:$4 sm:$0xff]  }
 0x1ac   : > { %2385 = vmatprep.subr.bf16.mxu0 %v3499_v31 }
 0x1fe   : > { %v1319_v32 = vpop.f32.mrb[20].mxu0 }
 0x1ff   : > { %v1321_v33 = vpop.f32.mrb[21].mxu0 }
 0x202   : > { %v1325_v34 = vpop.f32.mrb[22].mxu0 }
 0x203   : > { %v1327_v35 = vpop.f32.mrb[23].mxu0 }
 0x206   : > { %v1331_v36 = vpop.f32.mrb[24].mxu0 }
 0x207   : > { %v1333_v37 = vpop.f32.mrb[25].mxu0 }
 0x20a   : > { %v1337_v38 = vpop.f32.mrb[26].mxu0 }
 0x20b   : > { %v1339_v39 = vpop.f32.mrb[27].mxu0 }
 0x20e   : > { %v1343_v41 = vpop.f32.mrb[28].mxu0 }
 0x20f   : > { %v1345_v43 = vpop.f32.mrb[29].mxu0 }
 0x212   : > { %v1349_v45 = vpop.f32.mrb[30].mxu0 }
 0x213   : > { %v1351_v47 = vpop.f32.mrb[31].mxu0 }
 0x216   : > { %v4195_v48 = vpop.f32.mrb[32].mxu0 }
 0x217   : > { %v4197_v51 = vpop.f32.mrb[33].mxu0 }
 0x21a   : > { %v4199_v53 = vpop.f32.mrb[34].mxu0 }
 0x21b   : > { %v4201_v55 = vpop.f32.mrb[35].mxu0 }
 0x25f   : > { %v1951_v57 = vpop.f32.mrb[20].mxu1 }
 0x260   : > { %v3287_v60 = vadd.f32 %v1951_v57, %v1319_v32  ;;  %v1953_v63 = vpop.f32.mrb[21].mxu1 }
 0x261   : > { %v4208_v3 = vadd.f32 %v1953_v63, %v1321_v33 }
 0x262   : > { %v2021_v5 = vmul.f32 %v3287_v60, %v4206_v59  ;;  %v3509_v60 = vld [vmem:[%s4491_s3 + $0xa8] ss:$20 sps:$4 sm:$0xff]  }
 0x263   : > { %v1957_v9 = vpop.f32.mrb[22].mxu1 }
 0x264   : > { %v3289_v11 = vadd.f32 %v1957_v9, %v1325_v34  ;;  %v1959_v13 = vpop.f32.mrb[23].mxu1  ;;  %v2036_v42 = vadd.f32 %v4214_v7, %v2021_v5 }
 0x265   : > { %v4216_v14 = vadd.f32 %v1959_v13, %v1327_v35  ;;  %v3506_v35 = vld [vmem:[%s4491_s3 + $0x80] ss:$20 sps:$4 sm:$0xff]  }
 0x266   : > { %v2022_v46 = vmul.f32 %v3289_v11, %v4206_v59  ;;  %v2044_v44 = vmax.f32 %v2036_v42, 0.0 }
 0x267   : > { %v1963_v49 = vpop.f32.mrb[24].mxu1 }
 0x268   : > { %v2037_v15 = vadd.f32 %v4214_v7, %v2022_v46  ;;  %v3291_v16 = vadd.f32 %v1963_v49, %v1331_v36  ;;  %v1965_v17 = vpop.f32.mrb[25].mxu1 }
 0x269   : > { %v4221_v54 = vadd.f32 %v1965_v17, %v1333_v37  ;;  %v3521_v17 = vld [vmem:[%s4491_s3 + $0x10] ss:$20 sps:$4 sm:$0xff]  }
 0x26a   : > { %v2045_v50 = vmax.f32 %v2037_v15, 0.0  ;;  %v2023_v52 = vmul.f32 %v3291_v16, %v4206_v59  ;;  %v3520_v16 = vld [vmem:[%s4491_s3 + $0x124] ss:$20 sps:$4 sm:$0xff]  }
 0x26b   : > { %v1969_v56 = vpop.f32.mrb[26].mxu1 }
 0x26c   : > { %v4227_v61 = vpack.c.bf16 %v2045_v50, %v2044_v44  ;;  %v3293_v62 = vadd.f32 %v1969_v56, %v1337_v38  ;;  %v1971_v0 = vpop.f32.mrb[27].mxu1  ;;  %v2038_v1 = vadd.f32 %v4214_v7, %v2023_v52  ;;  %v3522_v44 = vld [vmem:[%s4491_s3 + $0x38] ss:$20 sps:$4 sm:$0xff]   ;;  %v3523_v50 = vld [vmem:[%s4491_s3 + $0x60] ss:$20 sps:$4 sm:$0xff]  }
 0x26d   : > { %v4232_v10 = vadd.f32 %v1971_v0, %v1339_v39  ;;  %v3511_v39 = vld [vmem:[%s4491_s3 + $0xac] ss:$20 sps:$4 sm:$0xff]   ;;  %v3524_v52 = vld [vmem:[%s4491_s3 + $0x88] ss:$20 sps:$4 sm:$0xff]   ;;  %v3525_v56 = vld [vmem:[%s4491_s3 + $0xb0] ss:$20 sps:$4 sm:$0xff]  }
 0x26e   : > { %v2024_v6 = vmul.f32 %v3293_v62, %v4206_v59  ;;  %2345 = vmatmul.mubr.bf16.vlgmr.msra.gmra.mrb[36].mxu0 %v4227_v61  ;;  %v2046_v23 = vmax.f32 %v2038_v1, 0.0  ;;  %v3527_v62 = vld [vmem:[%s4491_s3 + $0x100] ss:$20 sps:$4 sm:$0xff]   ;;  %v3528_v0 = vld [vmem:[%s4491_s3 + $0x128] ss:$20 sps:$4 sm:$0xff]  }
 0x26f   : > { %v1975_v8 = vpop.f32.mrb[28].mxu1  ;;  %2386 = vmatpush1.bf16.msra.mxu0 %v3497_v58  ;;  %2354 = vmatprep.mubr.bf16.mxu0 %v3537_v2  ;;  %v3526_v58 = vld [vmem:[%s4491_s3 + $0xd8] ss:$20 sps:$4 sm:$0xff]  }
 0x270   : > { %v2039_v18 = vadd.f32 %v4214_v7, %v2024_v6  ;;  %v3295_v19 = vadd.f32 %v1975_v8, %v1343_v41  ;;  %v1977_v20 = vpop.f32.mrb[29].mxu1  ;;  %2387 = vmatprep.subr.bf16.mxu0 %v3502_v4 }
 0x271   : > { %v4245_v22 = vadd.f32 %v1977_v20, %v1345_v43 }
 0x272   : > { %v2047_v24 = vmax.f32 %v2039_v18, 0.0  ;;  %v2025_v25 = vmul.f32 %v3295_v19, %v4206_v59 }
 0x273   : > { %v1981_v26 = vpop.f32.mrb[30].mxu1  ;;  %2388 = vmatpush1.bf16.msra.mxu0 %v3500_v12 }
 0x274   : > { %v3297_v40 = vadd.f32 %v1981_v26, %v1349_v45  ;;  %v1983_v28 = vpop.f32.mrb[31].mxu1  ;;  %v4251_v29 = vpack.c.bf16 %v2047_v24, %v2046_v23  ;;  %2389 = vmatprep.subr.bf16.mxu0 %v3505_v21  ;;  %v2040_v32 = vadd.f32 %v4214_v7, %v2025_v25 }
 0x275   : > { %v4256_v31 = vadd.f32 %v1983_v28, %v1351_v47 }
 0x276   : > { %v2026_v33 = vmul.f32 %v3297_v40, %v4206_v59  ;;  %2355 = vmatmul.mubr.bf16.gmra.mrb[40].mxu0 %v4251_v29  ;;  %v2048_v43 = vmax.f32 %v2040_v32, 0.0 }
 0x277   : > { %v1987_v34 = vpop.f32.mrb[32].mxu1  ;;  %2390 = vmatpush1.bf16.msra.mxu0 %v3503_v27  ;;  %2364 = vmatprep.mubr.bf16.mxu0 %v3537_v2 }
 0x278   : > { %v2041_v36 = vadd.f32 %v4214_v7, %v2026_v33  ;;  %v3299_v37 = vadd.f32 %v1987_v34, %v4195_v48  ;;  %v1989_v38 = vpop.f32.mrb[33].mxu1  ;;  %2391 = vmatprep.subr.bf16.mxu0 %v3508_v30 }
 0x279   : > { %v4271_v41 = vadd.f32 %v1989_v38, %v4197_v51  ;;  %v3514_v51 = vld [vmem:[%s4491_s3 + $0xd4] ss:$20 sps:$4 sm:$0xff]  }
 0x27a   : > { %v2049_v45 = vmax.f32 %v2041_v36, 0.0  ;;  %v2027_v47 = vmul.f32 %v3299_v37, %v4206_v59 }
 0x27b   : > { %v1993_v57 = vpop.f32.mrb[34].mxu1  ;;  %2392 = vmatpush1.bf16.msra.mxu0 %v3506_v35 }
 0x27c   : > { %v3301_v48 = vadd.f32 %v1993_v57, %v4199_v53  ;;  %v1995_v63 = vpop.f32.mrb[35].mxu1  ;;  %v2054_v5 = vpack.c.bf16 %v2049_v45, %v2048_v43  ;;  %2393 = vmatprep.subr.bf16.mxu0 %v3511_v39  ;;  %v2042_v11 = vadd.f32 %v4214_v7, %v2027_v47  ;;  %v3512_v53 = vld [vmem:[%s4491_s3 + $0xd0] ss:$20 sps:$4 sm:$0xff]  }
 0x27d   : > { %v4282_v9 = vadd.f32 %v1995_v63, %v4201_v55  ;;  %v3517_v55 = vld [vmem:[%s4491_s3 + $0xfc] ss:$20 sps:$4 sm:$0xff]  }
 0x27e   : > { %v2028_v13 = vmul.f32 %v3301_v48, %v4206_v59  ;;  %2365 = vmatmul.mubr.bf16.gmra.mrb[44].mxu0 %v2054_v5  ;;  %v2050_v46 = vmax.f32 %v2042_v11, 0.0  ;;  %v3515_v59 = vld [vmem:[%s4491_s3 + $0xf8] ss:$20 sps:$4 sm:$0xff]  }
 0x27f   : > { %2394 = vmatpush1.bf16.msra.mxu0 %v3509_v60  ;;  %2374 = vmatprep.mubr.bf16.mxu0 %v3537_v2 }
 0x280   : > { %v2043_v42 = vadd.f32 %v4214_v7, %v2028_v13  ;;  %2395 = vmatprep.subr.bf16.mxu0 %v3514_v51  ;;  %v3518_v7 = vld [vmem:[%s4491_s3 + $0x120] ss:$20 sps:$4 sm:$0xff]  }
 0x282   : > { %v2051_v49 = vmax.f32 %v2043_v42, 0.0 }
 0x283   : > { %2396 = vmatpush1.bf16.msra.mxu0 %v3512_v53 }
 0x284   : > { %v2055_v15 = vpack.c.bf16 %v2051_v49, %v2050_v46  ;;  %2397 = vmatprep.subr.bf16.mxu0 %v3517_v55 }
 0x286   : > { %2375 = vmatmul.mubr.bf16.gmra.mrb[48].mxu0 %v2055_v15 }
 0x287   : > { %2398 = vmatpush1.bf16.msra.mxu0 %v3515_v59  ;;  %2417 = vmatprep.mubr.bf16.mxu0 %v3537_v2 }
 0x288   : > { %2399 = vmatprep.subr.bf16.mxu0 %v3520_v16 }
 0x28b   : > { %2400 = vmatpush1.bf16.msra.mxu0 %v3518_v7 }
 0x28c   : > { %3223 = vmatprep.subr.bf16.mxu0 %v3521_v17 }
 0x28e   : > { %2418 = vmatmul.mubr.bf16.vlgmr.msra.gmra.mrb[52].mxu0 %v4227_v61 }
 0x28f   : > { %3224 = vmatpush3.bf16.msra.mxu0 %v3521_v17  ;;  %2427 = vmatprep.mubr.bf16.mxu0 %v3537_v2 }
 0x290   : > { %3225 = vmatprep.subr.bf16.mxu0 %v3522_v44 }
 0x293   : > { %3226 = vmatpush3.bf16.msra.mxu0 %v3522_v44 }
 0x294   : > { %3227 = vmatprep.subr.bf16.mxu0 %v3523_v50 }
 0x296   : > { %2428 = vmatmul.mubr.bf16.gmra.mrb[56].mxu0 %v4251_v29 }
 0x297   : > { %3228 = vmatpush3.bf16.msra.mxu0 %v3523_v50  ;;  %2437 = vmatprep.mubr.bf16.mxu0 %v3537_v2 }
 0x298   : > { %3229 = vmatprep.subr.bf16.mxu0 %v3524_v52 }
 0x29b   : > { %3230 = vmatpush3.bf16.msra.mxu0 %v3524_v52 }
 0x29c   : > { %3231 = vmatprep.subr.bf16.mxu0 %v3525_v56 }
 0x29e   : > { %2438 = vmatmul.mubr.bf16.gmra.mrb[60].mxu0 %v2054_v5 }
 0x29f   : > { %3232 = vmatpush3.bf16.msra.mxu0 %v3525_v56  ;;  %2447 = vmatprep.mubr.bf16.mxu0 %v3537_v2  ;;  %v2523_v2 = vlaneseq }
 0x2a0   : > { %3233 = vmatprep.subr.bf16.mxu0 %v3526_v58 }
 0x2a1   : > { %v4335_v4 = vshrl.u32 %v2523_v2, 7 }
 0x2a3   : > { %3234 = vmatpush3.bf16.msra.mxu0 %v3526_v58  ;;  %vm2636_vm1 = vcmp.lt.s32.totalorder %v4335_v4, 6  ;;  %vm2693_vm2 = vcmp.lt.s32.totalorder %v4335_v4, 7  ;;  %v2527_v50 = vadd.s32 24, %v4335_v4  ;;  %vm2750_vm3 = vcmp.lt.s32.totalorder %v4335_v4, 1 }
 0x2a4   : > { %3235 = vmatprep.subr.bf16.mxu0 %v3527_v62  ;;  %vm2807_vm10 = vcmp.lt.s32.totalorder %v4335_v4, 2 }
 0x2a6   : > { %2448 = vmatmul.mubr.bf16.gmra.mrb[64].mxu0 %v2055_v15 }
 0x2a7   : > { %3236 = vmatpush3.bf16.msra.mxu0 %v3527_v62  ;;  %3239 = vmatprep.mubr.bf16.mxu0 %v4227_v61 }
 0x2a8   : > { %3237 = vmatprep.subr.bf16.mxu0 %v3528_v0 }
 0x2ab   : > { %3238 = vmatpush3.bf16.msra.mxu0 %v3528_v0 }
 0x2ae   : > { %3240 = vmatmul.mubr.bf16.vlgmr.msra.gmra.mrb[68].mxu0 %v4251_v29 }
 0x2af   : > { %3243 = vmatprep.mubr.bf16.mxu0 %v2054_v5 }
 0x2b6   : > { %3244 = vmatmul.mubr.bf16.gmra.mrb[72].mxu0 %v2055_v15 }
 0x341   : > { %v2346_v1 = vpop.f32.mrb[36].mxu0 }
 0x342   : > { %v2348_v6 = vpop.f32.mrb[37].mxu0  ;;  %v2628_v12 = vrot.slane %v2346_v1, 2 }
 0x343   : > { %v2350_v8 = vpop.f32.mrb[38].mxu0  ;;  %v2685_v61 = vrot.slane %v2348_v6, 1  ;;  %v2557_v6 = vand.u32 31, %v2527_v50 }
 0x344   : > { %v2629_v18 = vrot.slane %v2350_v8, 2  ;;  %v2352_v19 = vpop.f32.mrb[39].mxu0 }
 0x345   : > { %v2686_v20 = vrot.slane %v2352_v19, 1  ;;  %vm2648_vm4 = vcmp.lt.s32.totalorder %v2557_v6, 30  ;;  %vm2705_vm5 = vcmp.lt.s32.totalorder %v2557_v6, 31 }
 0x346   : > { %v2643_v21 = vsel %vm2636_vm1, %v2628_v12, %v2629_v18 }
 0x347   : > { %v2700_v23 = vsel %vm2693_vm2, %v2685_v61, %v2686_v20 }
 0x349   : > { %v2356_v24 = vpop.f32.mrb[40].mxu0 }
 0x34a   : > { %v2630_v25 = vrot.slane %v2356_v24, 2  ;;  %v2358_v26 = vpop.f32.mrb[41].mxu0 }
 0x34b   : > { %v2687_v27 = vrot.slane %v2358_v26, 1  ;;  %v2360_v40 = vpop.f32.mrb[42].mxu0 }
 0x34c   : > { %v2631_v28 = vrot.slane %v2360_v40, 2  ;;  %v2362_v29 = vpop.f32.mrb[43].mxu0  ;;  %v2642_v30 = vsel %vm2636_vm1, %v2629_v18, %v2630_v25 }
 0x34d   : > { %v2688_v32 = vrot.slane %v2362_v29, 1  ;;  %v2699_v33 = vsel %vm2693_vm2, %v2686_v20, %v2687_v27 }
 0x34e   : > { %v2641_v34 = vsel %vm2636_vm1, %v2630_v25, %v2631_v28 }
 0x34f   : > { %v2698_v35 = vsel %vm2693_vm2, %v2687_v27, %v2688_v32  ;;  %v4391_v27 = vadd.s32 32, %v4335_v4 }
 0x351   : > { %v2366_v36 = vpop.f32.mrb[44].mxu0 }
 0x352   : > { %v2632_v37 = vrot.slane %v2366_v36, 2  ;;  %v2368_v38 = vpop.f32.mrb[45].mxu0 }
 0x353   : > { %v2689_v39 = vrot.slane %v2368_v38, 1  ;;  %v2370_v43 = vpop.f32.mrb[46].mxu0  ;;  %v2564_v38 = vand.u32 31, %v4391_v27 }
 0x354   : > { %v2633_v45 = vrot.slane %v2370_v43, 2  ;;  %v2372_v47 = vpop.f32.mrb[47].mxu0  ;;  %v2640_v57 = vsel %vm2636_vm1, %v2631_v28, %v2632_v37  ;;  %v2531_v43 = vadd.s32 56, %v4335_v4 }
 0x355   : > { %v2690_v60 = vrot.slane %v2372_v47, 1  ;;  %v2697_v48 = vsel %vm2693_vm2, %v2688_v32, %v2689_v39  ;;  %v2672_v26 = vsel %vm2648_vm4, %v2640_v57, 0.0  ;;  %vm2763_vm6 = vcmp.ge.s32.totalorder %v2564_v38, 1 }
 0x356   : > { %v2639_v63 = vsel %vm2636_vm1, %v2632_v37, %v2633_v45  ;;  %v2729_v32 = vsel %vm2705_vm5, %v2697_v48, 0.0  ;;  %vm4448_vm11 = vcmp.ge.s32.totalorder %v2564_v38, 2 }
 0x357   : > { %v2696_v5 = vsel %vm2693_vm2, %v2689_v39, %v2690_v60 }
 0x359   : > { %v2376_v51 = vpop.f32.mrb[48].mxu0 }
 0x35a   : > { %v2634_v11 = vrot.slane %v2376_v51, 2  ;;  %v2378_v13 = vpop.f32.mrb[49].mxu0 }
 0x35b   : > { %v2691_v53 = vrot.slane %v2378_v13, 1  ;;  %v2380_v42 = vpop.f32.mrb[50].mxu0  ;;  %v2585_v13 = vand.u32 31, %v2531_v43 }
 0x35c   : > { %v2635_v55 = vrot.slane %v2380_v42, 2  ;;  %v2382_v46 = vpop.f32.mrb[51].mxu0  ;;  %v2638_v49 = vsel %vm2636_vm1, %v2633_v45, %v2634_v11 }
 0x35d   : > { %v2692_v59 = vrot.slane %v2382_v46, 1  ;;  %v2695_v15 = vsel %vm2693_vm2, %v2690_v60, %v2691_v53  ;;  %vm2652_vm7 = vcmp.lt.s32.totalorder %v2585_v13, 30  ;;  %vm2709_vm8 = vcmp.lt.s32.totalorder %v2585_v13, 31 }
 0x35e   : > { %v2637_v16 = vsel %vm2636_vm1, %v2634_v11, %v2635_v55  ;;  %v4367_v7 = vsel %vm2636_vm1, %v2635_v55, %v2628_v12 }
 0x35f   : > { %v4371_v17 = vsel %vm2693_vm2, %v2691_v53, %v2692_v59  ;;  %v4375_v44 = vsel %vm2693_vm2, %v2692_v59, %v2685_v61 }
 0x361   : > { %v2419_v52 = vpop.f32.mrb[52].mxu0 }
 0x362   : > { %v2677_v56 = vadd.f32 %v2643_v21, %v2419_v52  ;;  %v4378_v58 = vpop.f32.mrb[53].mxu0 }
 0x363   : > { %v2423_v62 = vpop.f32.mrb[54].mxu0  ;;  %v2742_v8 = vrot.slane %v4378_v58, 7 }
 0x364   : > { %v4380_v0 = vadd.f32 %v2700_v23, %v2677_v56  ;;  %v2678_v2 = vadd.f32 %v2642_v30, %v2423_v62  ;;  %v2425_v1 = vpop.f32.mrb[55].mxu0 }
 0x365   : > { %v2743_v12 = vrot.slane %v2425_v1, 7  ;;  %v2676_v1 = vsel %vm2652_vm7, %v4367_v7, 0.0 }
 0x366   : > { %v2735_v18 = vadd.f32 %v2699_v33, %v2678_v2 }
 0x367   : > { %v2757_v19 = vsel %vm2750_vm3, %v2742_v8, %v2743_v12 }
 0x368   : > { %v4388_v61 = vadd.f32 %v2757_v19, %v2735_v18  ;;  %v2733_v19 = vsel %vm2709_vm8, %v4375_v44, 0.0 }
 0x369   : > { %v2429_v20 = vpop.f32.mrb[56].mxu0 }
 0x36a   : > { %v2679_v21 = vadd.f32 %v2641_v34, %v2429_v20  ;;  %v2431_v23 = vpop.f32.mrb[57].mxu0 }
 0x36b   : > { %v2744_v24 = vrot.slane %v2431_v23, 7  ;;  %v2433_v25 = vpop.f32.mrb[58].mxu0 }
 0x36c   : > { %v2736_v40 = vadd.f32 %v2698_v35, %v2679_v21  ;;  %v2680_v28 = vadd.f32 %v2672_v26, %v2433_v25  ;;  %v2435_v29 = vpop.f32.mrb[59].mxu0 }
 0x36d   : > { %v2756_v30 = vsel %vm2750_vm3, %v2743_v12, %v2744_v24  ;;  %v2745_v33 = vrot.slane %v2435_v29, 7 }
 0x36e   : > { %v4395_v36 = vadd.f32 %v2756_v30, %v2736_v40  ;;  %v2737_v37 = vadd.f32 %v2729_v32, %v2680_v28 }
 0x36f   : > { %v2755_v34 = vsel %vm2750_vm3, %v2744_v24, %v2745_v33 }
 0x370   : > { %v2794_v39 = vadd.f32 %v2755_v34, %v2737_v37  ;;  %v3148_v34 = vld [vmem:[%s4497_s9] ss:$0 sm:$0xff] }
 0x371   : > { %v2439_v45 = vpop.f32.mrb[60].mxu0 }
 0x372   : > { %v2681_v35 = vadd.f32 %v2639_v63, %v2439_v45  ;;  %v2441_v47 = vpop.f32.mrb[61].mxu0 }
 0x373   : > { %v2746_v57 = vrot.slane %v2441_v47, 7  ;;  %v2443_v60 = vpop.f32.mrb[62].mxu0 }
 0x374   : > { %v2738_v48 = vadd.f32 %v2696_v5, %v2681_v35  ;;  %v2682_v51 = vadd.f32 %v2638_v49, %v2443_v60  ;;  %v2445_v11 = vpop.f32.mrb[63].mxu0  ;;  %v2536_v5 = vand.u32 31, %v4335_v4 }
 0x375   : > { %v2754_v53 = vsel %vm2750_vm3, %v2745_v33, %v2746_v57  ;;  %v2747_v42 = vrot.slane %v2445_v11, 7 }
 0x376   : > { %v2787_v55 = vsel %vm2763_vm6, %v2754_v53, 0.0  ;;  %v2739_v46 = vadd.f32 %v2695_v15, %v2682_v51  ;;  %vm2759_vm9 = vcmp.ge.s32.totalorder %v2536_v5, 1  ;;  %vm4452_vm12 = vcmp.ge.s32.totalorder %v2536_v5, 2 }
 0x377   : > { %v4405_v59 = vadd.f32 %v2787_v55, %v2738_v48  ;;  %v2753_v63 = vsel %vm2750_vm3, %v2746_v57, %v2747_v42 }
 0x378   : > { %v4409_v50 = vadd.f32 %v2753_v63, %v2739_v46 }
 0x379   : > { %v2449_v52 = vpop.f32.mrb[64].mxu0 }
 0x37a   : > { %v2683_v49 = vadd.f32 %v2637_v16, %v2449_v52  ;;  %v2451_v56 = vpop.f32.mrb[65].mxu0 }
 0x37b   : > { %v2748_v62 = vrot.slane %v2451_v56, 7  ;;  %v2453_v2 = vpop.f32.mrb[66].mxu0 }
 0x37c   : > { %v2740_v15 = vadd.f32 %v4371_v17, %v2683_v49  ;;  %v2684_v6 = vadd.f32 %v2676_v1, %v2453_v2  ;;  %v2455_v12 = vpop.f32.mrb[67].mxu0 }
 0x37d   : > { %v2752_v18 = vsel %vm2750_vm3, %v2747_v42, %v2748_v62  ;;  %v2749_v20 = vrot.slane %v2455_v12, 7 }
 0x37e   : > { %v2797_v16 = vadd.f32 %v2752_v18, %v2740_v15  ;;  %v2741_v21 = vadd.f32 %v2733_v19, %v2684_v6 }
 0x37f   : > { %v2751_v23 = vsel %vm2750_vm3, %v2748_v62, %v2749_v20  ;;  %v2758_v7 = vsel %vm2750_vm3, %v2749_v20, %v2742_v8 }
 0x380   : > { %v2783_v17 = vsel %vm2759_vm9, %v2758_v7, 0.0  ;;  %v2798_v24 = vadd.f32 %v2751_v23, %v2741_v21 }
 0x381   : > { %v2791_v25 = vadd.f32 %v2783_v17, %v4380_v0  ;;  %v3241_v26 = vpop.f32.mrb[68].mxu0 }
 0x382   : > { %v2492_v40 = vpop.f32.mrb[69].mxu0  ;;  %v2801_v28 = vrot.slane %v3241_v26, 6 }
 0x383   : > { %v3242_v44 = vpop.f32.mrb[70].mxu0  ;;  %v2799_v32 = vrot.slane %v2492_v40, 6 }
 0x384   : > { %v2802_v29 = vrot.slane %v3242_v44, 6  ;;  %v2495_v30 = vpop.f32.mrb[71].mxu0 }
 0x385   : > { %v2800_v33 = vrot.slane %v2495_v30, 6 }
 0x386   : > { %v2812_v58 = vsel %vm2807_vm10, %v2801_v28, %v2802_v29 }
 0x387   : > { %v2851_v8 = vadd.f32 %v2812_v58, %v2794_v39  ;;  %v2813_v37 = vsel %vm2807_vm10, %v2800_v33, %v2801_v28  ;;  %v2814_v0 = vsel %vm2807_vm10, %v2799_v32, %v2800_v33 }
 0x388   : > { %v2849_v43 = vadd.f32 %v2814_v0, %v4388_v61  ;;  %v2850_v45 = vadd.f32 %v2813_v37, %v4395_v36 }
 0x389   : > { %v2859_v35 = vadd.f32 %v4232_v10, %v2851_v8  ;;  %v3245_v47 = vpop.f32.mrb[72].mxu0 }
 0x38a   : > { %v2857_v39 = vadd.f32 %v4216_v14, %v2849_v43  ;;  %v2858_v57 = vadd.f32 %v4221_v54, %v2850_v45  ;;  %v2508_v60 = vpop.f32.mrb[73].mxu0  ;;  %v2805_v13 = vrot.slane %v3245_v47, 6 }
 0x38b   : > { %v2874_v48 = vadd.f32 %v3148_v34, %v2859_v35  ;;  %v2803_v61 = vrot.slane %v2508_v60, 6  ;;  %v3246_v36 = vpop.f32.mrb[74].mxu0 }
 0x38c   : > { %v2872_v11 = vadd.f32 %v3148_v34, %v2857_v39  ;;  %v2873_v14 = vadd.f32 %v3148_v34, %v2858_v57  ;;  %v2806_v53 = vrot.slane %v3246_v36, 6  ;;  %v2511_v54 = vpop.f32.mrb[75].mxu0 }
 0x38d   : > { %2882 = vst [vmem:[%s4442_s12 + $0x18] sm:$0xff] %v2874_v48  ;;  %v2811_v42 = vsel %vm2807_vm10, %v2802_v29, %v2803_v61  ;;  %v2804_v55 = vrot.slane %v2511_v54, 6 }
 0x38e   : > { %2880 = vst [vmem:[%s4442_s12 + $0x8] sm:$0xff] %v2872_v11  ;;  %2881 = vst [vmem:[%s4442_s12 + $0x10] sm:$0xff] %v2873_v14  ;;  %v2844_v27 = vsel %vm4448_vm11, %v2811_v42, 0.0  ;;  %v2808_v38 = vsel %vm2807_vm10, %v2805_v13, %v2806_v53  ;;  %v2815_v46 = vsel %vm2807_vm10, %v2806_v53, %v2799_v32 }
 0x38f   : > { %v2852_v63 = vadd.f32 %v2844_v27, %v4405_v59  ;;  %v2840_v52 = vsel %vm4452_vm12, %v2815_v46, 0.0  ;;  %v2855_v5 = vadd.f32 %v2808_v38, %v2798_v24  ;;  %v2809_v49 = vsel %vm2807_vm10, %v2804_v55, %v2805_v13 }
 0x390   : > { %v2848_v56 = vadd.f32 %v2840_v52, %v2791_v25  ;;  %v2810_v62 = vsel %vm2807_vm10, %v2803_v61, %v2804_v55  ;;  %v2854_v2 = vadd.f32 %v2809_v49, %v2797_v16 }
 0x391   : > { %v2860_v1 = vadd.f32 %v4245_v22, %v2852_v63  ;;  %v2863_v59 = vadd.f32 %v4282_v9, %v2855_v5  ;;  %v2853_v15 = vadd.f32 %v2810_v62, %v4409_v50 }
 0x392   : > { %v2856_v6 = vadd.f32 %v4208_v3, %v2848_v56  ;;  %v2862_v12 = vadd.f32 %v4271_v41, %v2854_v2 }
 0x393   : > { %v2875_v18 = vadd.f32 %v3148_v34, %v2860_v1  ;;  %v2878_v19 = vadd.f32 %v3148_v34, %v2863_v59  ;;  %v2861_v20 = vadd.f32 %v4256_v31, %v2853_v15 }
 0x394   : > { %v2871_v4 = vadd.f32 %v3148_v34, %v2856_v6  ;;  %v2877_v21 = vadd.f32 %v3148_v34, %v2862_v12 }
 0x395   : > { %2883 = vst [vmem:[%s4442_s12 + $0x20] sm:$0xff] %v2875_v18  ;;  %2886 = vst [vmem:[%s4442_s12 + $0x38] sm:$0xff] %v2878_v19  ;;  %v2876_v16 = vadd.f32 %v3148_v34, %v2861_v20 }
 0x396   : > { %2879 = vst [vmem:[%s4442_s12] sm:$0xff] %v2871_v4  ;;  %2885 = vst [vmem:[%s4442_s12 + $0x30] sm:$0xff] %v2877_v21 }
 0x397   : > { %2884 = vst [vmem:[%s4442_s12 + $0x28] sm:$0xff] %v2876_v16 }
 0x398 PF: > { %s20_s13 = sadd.s32 1, %s3535_s13  }
 0x399   : > { %p17_p5 = scmp.ge.s32.totalorder %s20_s13, 6  }
 0x39b   :  { %19 = sbr.rel (!%p17_p5) target bundleno = 1 (0x1), region = 94 }

</bundles_post_ra>
